<compile_context>
chip_gen: v6e
topology: v6e:2x2x1
jax: 0.10.0
libtpu: 0.0.40
codegen_flags: <defaults>
</compile_context>

<pallas_src>
import functools
import math

import jax
import jax.numpy as jnp
from jax.experimental import pallas as pl
from jax.experimental.pallas import tpu as pltpu

SCALE_CLAMP = math.log(1000.0 / 16.0)  # detectron2 Box2BoxTransform default


# -----------------------------------------------------------------------------
# Fused Pallas kernel: 3x3 conv + ReLU + fused 1x1 heads + box decode + clip
# -----------------------------------------------------------------------------
def rpn_fused_kernel(xm_ref, xh_ref, wc_ref, bc_ref, wf_ref, bf_ref, anc_ref,
                     out_ref, *, A, img_h, img_w):
    # xm_ref : (1, TH, W+2, C)   main row tile of the zero-padded NHWC features
    # xh_ref : (1, 2,  W+2, C)   2-row halo below the tile
    # wc_ref : (3, 3C, CM)       3x3 conv weights, row-tap major, (dx, c) minor
    # bc_ref : (1, CM)
    # wf_ref : (CM, P)           fused 1x1 weights: [deltas coord-major | obj | 0-pad]
    # bf_ref : (1, P)
    # anc_ref: (TH, W, 4A)       anchors, coord-major [x0(A), y0(A), x1(A), y1(A)]
    # out_ref: (1, TH, W, P)     [boxes coord-major (4A) | obj logits (A) | 0-pad]
    TH, Wp, C = xm_ref.shape[1], xm_ref.shape[2], xm_ref.shape[3]
    W = Wp - 2
    P = wf_ref.shape[1]
    A4 = 4 * A

    # Assemble the (TH+2, W+2, C) row window (main tile + halo).
    x = jnp.concatenate([xm_ref[0], xh_ref[0]], axis=0)
    # Column taps concatenated once on the channel axis -> (TH+2, W, 3C).
    xw = jnp.concatenate(
        [x[:, 0:W, :], x[:, 1:W + 1, :], x[:, 2:W + 2, :]], axis=-1)

    # 3x3 conv as 3 row-tap matmuls, contraction depth 3C, flattened to 2D.
    acc = None
    for dy in range(3):
        tap = xw[dy:dy + TH].reshape(TH * W, 3 * C)
        part = jnp.dot(tap, wc_ref[dy], preferred_element_type=jnp.float32)
        acc = part if acc is None else acc + part
    hidden = jnp.maximum(acc + bc_ref[...], 0.0)            # (TH*W, CM) f32
    # TODO(synk): feature_per_level (the conv hidden) is only consumed by the
    # optional IOU_CONT WeightHead during training; its HBM writeback is
    # intentionally dropped here.

    # Fused 1x1 heads (lane-dense, padded to P>=128):
    #   cols [0:4A)  = anchor deltas, coord-major [dx(A), dy(A), dw(A), dh(A)]
    #   cols [4A:5A) = objectness logits
    raw = jnp.dot(hidden.astype(xm_ref.dtype), wf_ref[...],
                  preferred_element_type=jnp.float32) + bf_ref[...]

    # Box2BoxTransform.apply_deltas + Boxes.clip, fused in the epilogue.
    anc = anc_ref[...].reshape(TH * W, A4)
    wh = anc[:, 2 * A:A4] - anc[:, 0:2 * A]                  # [w(A), h(A)]
    ctr = anc[:, 0:2 * A] + 0.5 * wh                         # [cx(A), cy(A)]
    dxy = raw[:, 0:2 * A]
    dwh = jnp.minimum(raw[:, 2 * A:A4], SCALE_CLAMP)
    pctr = dxy * wh + ctr
    pwh = jnp.exp(dwh) * wh
    p0 = pctr - 0.5 * pwh                                    # [x0, y0]
    p1 = pctr + 0.5 * pwh                                    # [x1, y1]
    x0 = jnp.clip(p0[:, 0:A], 0.0, img_w)
    y0 = jnp.clip(p0[:, A:2 * A], 0.0, img_h)
    x1 = jnp.clip(p1[:, 0:A], 0.0, img_w)
    y1 = jnp.clip(p1[:, A:2 * A], 0.0, img_h)

    out = jnp.concatenate([x0, y0, x1, y1, raw[:, A4:]], axis=-1)  # (TH*W, P)
    out_ref[0] = out.reshape(TH, W, P)


def rpn_forward(x_nchw, params, anchor_table, img_h, img_w, *,
                tile_h=8, compute_dtype=jnp.float32):
    """Fused RPN head + proposal decode.

    Returns (objectness_logits (B,H,W,A), scores (B,N), boxes (B,N,4)) with
    N = H*W*A and boxes already decoded + clipped to the image.
    """
    B, C, H, W = x_nchw.shape
    CM = params['w_conv'].shape[-1]
    A = params['w_obj'].shape[-1]
    A4 = 4 * A
    P = max(128, ((5 * A + 127) // 128) * 128)   # lane-dense fused head width
    assert tile_h % 2 == 0, "tile_h must be even (halo block indexing)"
    T = (H + tile_h - 1) // tile_h
    Hp = T * tile_h

    # NCHW -> NHWC; zero pad: 1 halo row top, (Hp+1-H) rows bottom, 1 col each side.
    x = jnp.transpose(x_nchw, (0, 2, 3, 1)).astype(compute_dtype)
    xp = jnp.pad(x, ((0, 0), (1, Hp + 1 - H), (1, 1), (0, 0)))
    # TODO(synk): fold the pad/transpose into the feature-map producer (or zero
    # the halo directly in VMEM) to save this extra HBM pass.

    wc = params['w_conv'].reshape(3, 3 * C, CM).astype(compute_dtype)
    bc = params['b_conv'].reshape(1, CM).astype(jnp.float32)

    # Fused 1x1 head weight: [deltas coord-major | objectness | zero pad to P].
    w_del_cm = params['w_del'].reshape(CM, A, 4).transpose(0, 2, 1).reshape(CM, A4)
    b_del_cm = params['b_del'].reshape(A, 4).transpose(1, 0).reshape(1, A4)
    wf = jnp.concatenate(
        [w_del_cm, params['w_obj'],
         jnp.zeros((CM, P - 5 * A), jnp.float32)], axis=1).astype(compute_dtype)
    bf = jnp.concatenate(
        [b_del_cm, params['b_obj'].reshape(1, A),
         jnp.zeros((1, P - 5 * A), jnp.float32)], axis=1).astype(jnp.float32)

    anc_p = jnp.pad(anchor_table, ((0, Hp - H), (0, 0), (0, 0))).astype(jnp.float32)

    kernel = functools.partial(rpn_fused_kernel, A=A,
                               img_h=float(img_h), img_w=float(img_w))

    fused = pl.pallas_call(
        kernel,
        out_shape=jax.ShapeDtypeStruct((B, Hp, W, P), jnp.float32),
        grid=(B, T),
        in_specs=[
            # main row tile (TH rows of the padded feature map)
            pl.BlockSpec((1, tile_h, W + 2, C), lambda b, t: (b, t, 0, 0)),
            # 2-row halo directly below the tile (same array, shifted blocks)
            pl.BlockSpec((1, 2, W + 2, C),
                         lambda b, t: (b, (t + 1) * (tile_h // 2), 0, 0)),
            pl.BlockSpec((3, 3 * C, CM), lambda b, t: (0, 0, 0)),
            pl.BlockSpec((1, CM), lambda b, t: (0, 0)),
            pl.BlockSpec((CM, P), lambda b, t: (0, 0)),
            pl.BlockSpec((1, P), lambda b, t: (0, 0)),
            pl.BlockSpec((tile_h, W, A4), lambda b, t: (t, 0, 0)),
        ],
        out_specs=pl.BlockSpec((1, tile_h, W, P), lambda b, t: (b, t, 0, 0)),
        compiler_params=pltpu.CompilerParams(
            # both axes independent -> lets v7x's 2 TCs split work even at B=1
            dimension_semantics=("parallel", "parallel"),
            # 48 MiB is safe on all generations (v7x has 64 MiB/TC; raise toward
            # ~96-112 MiB on v5e/v6e and retune tile_h per generation).
            vmem_limit_bytes=48 * 1024 * 1024),
    )(xp, xp, wc, bc, wf, bf, anc_p)

    fused = fused[:, :H]                                     # drop padded rows
    obj_logits = fused[..., A4:A4 + A]                       # (B, H, W, A)
    boxes = (fused[..., :A4].reshape(B, H, W, 4, A)
             .transpose(0, 1, 2, 4, 3).reshape(B, H * W * A, 4))
    scores = obj_logits.reshape(B, H * W * A)
    return obj_logits, scores, boxes


# -----------------------------------------------------------------------------
# Plain-JAX glue: anchor generation (DefaultAnchorGenerator semantics)
# -----------------------------------------------------------------------------
def generate_anchors(H, W, stride, sizes, aspect_ratios):
    base = []
    for s in sizes:
        area = float(s) * float(s)
        for ar in aspect_ratios:
            w = math.sqrt(area / ar)
            h = ar * w
            base.append([-w / 2.0, -h / 2.0, w / 2.0, h / 2.0])
    base = jnp.asarray(base, jnp.float32)                       # (A, 4)
    shifts_x = jnp.arange(W, dtype=jnp.float32) * stride
    shifts_y = jnp.arange(H, dtype=jnp.float32) * stride
    sy, sx = jnp.meshgrid(shifts_y, shifts_x, indexing='ij')
    shifts = jnp.stack([sx.reshape(-1), sy.reshape(-1),
                        sx.reshape(-1), sy.reshape(-1)], axis=1)  # (H*W, 4)
    anchors = (shifts[:, None, :] + base[None, :, :]).reshape(-1, 4)
    return anchors                                               # (H*W*A, 4)


def build_anchor_table(anchors_flat, H, W, A):
    """(H*W*A, 4) XYXY anchors -> (H, W, 4A) coord-major table for the kernel."""
    return (anchors_flat.reshape(H, W, A, 4)
            .transpose(0, 1, 3, 2).reshape(H, W, 4 * A))


# -----------------------------------------------------------------------------
# Pure-JAX references for correctness checking
# -----------------------------------------------------------------------------
def rpn_head_reference(x_nchw, params):
    x = jnp.transpose(x_nchw, (0, 2, 3, 1))
    hidden = jax.lax.conv_general_dilated(
        x, params['w_conv'], window_strides=(1, 1), padding='SAME',
        dimension_numbers=('NHWC', 'HWIO', 'NHWC'))
    hidden = jnp.maximum(hidden + params['b_conv'].reshape(1, 1, 1, -1), 0.0)
    obj = jnp.einsum('bhwc,ca->bhwa', hidden, params['w_obj']) \
        + params['b_obj'].reshape(1, 1, 1, -1)
    dlt = jnp.einsum('bhwc,cd->bhwd', hidden, params['w_del']) \
        + params['b_del'].reshape(1, 1, 1, -1)
    return hidden, obj, dlt


def decode_reference(anchors_n4, deltas_bn4, img_h, img_w):
    w = anchors_n4[:, 2] - anchors_n4[:, 0]
    h = anchors_n4[:, 3] - anchors_n4[:, 1]
    cx = anchors_n4[:, 0] + 0.5 * w
    cy = anchors_n4[:, 1] + 0.5 * h
    dx, dy = deltas_bn4[..., 0], deltas_bn4[..., 1]
    dw = jnp.minimum(deltas_bn4[..., 2], SCALE_CLAMP)
    dh = jnp.minimum(deltas_bn4[..., 3], SCALE_CLAMP)
    pcx = dx * w + cx
    pcy = dy * h + cy
    pw = jnp.exp(dw) * w
    ph = jnp.exp(dh) * h
    x0 = jnp.clip(pcx - 0.5 * pw, 0.0, img_w)
    y0 = jnp.clip(pcy - 0.5 * ph, 0.0, img_h)
    x1 = jnp.clip(pcx + 0.5 * pw, 0.0, img_w)
    y1 = jnp.clip(pcy + 0.5 * ph, 0.0, img_h)
    return jnp.stack([x0, y0, x1, y1], axis=-1)


# -----------------------------------------------------------------------------
if __name__ == "__main__":
    key = jax.random.PRNGKey(0)

    # Small synthetic shapes: one feature level "p3".
    B, C, H, W = 2, 4, 16, 16
    CM = C                          # StandardRPNHead: conv out_channels == in
    sizes = (32,)
    aspect_ratios = (0.5, 1.0, 2.0)
    A = len(sizes) * len(aspect_ratios)
    stride = 8
    img_h, img_w = H * stride, W * stride
    pre_nms_topk = 1000

    ks = jax.random.split(key, 7)
    x = jax.random.normal(ks[0], (B, C, H, W), jnp.float32)
    params = {
        'w_conv': jax.random.normal(ks[1], (3, 3, C, CM), jnp.float32) * 0.05,
        'b_conv': jax.random.normal(ks[2], (1, CM), jnp.float32) * 0.02,
        'w_obj':  jax.random.normal(ks[3], (CM, A), jnp.float32) * 0.05,
        'b_obj':  jax.random.normal(ks[4], (1, A), jnp.float32) * 0.02,
        'w_del':  jax.random.normal(ks[5], (CM, 4 * A), jnp.float32) * 0.05,
        'b_del':  jax.random.normal(ks[6], (1, 4 * A), jnp.float32) * 0.02,
    }

    anchors = generate_anchors(H, W, stride, sizes, aspect_ratios)  # (N, 4)
    N = anchors.shape[0]
    anc_table = build_anchor_table(anchors, H, W, A)                # (H, W, 4A)

    # ---- fused RPN head + proposal decode (Pallas), f32 matmuls ----
    obj, scores, boxes = rpn_forward(x, params, anc_table, img_h, img_w,
                                     tile_h=8, compute_dtype=jnp.float32)
    jax.block_until_ready((obj, scores, boxes))

    # Check against pure-JAX reference.
    hid_r, obj_r, dlt_r = rpn_head_reference(x, params)
    boxes_r = decode_reference(anchors, dlt_r.reshape(B, N, 4),
                               float(img_h), float(img_w))
    assert jnp.allclose(obj, obj_r, rtol=1e-3, atol=2e-2)
    assert jnp.allclose(scores, obj_r.reshape(B, N), rtol=1e-3, atol=2e-2)
    assert jnp.allclose(boxes, boxes_r, rtol=1e-3, atol=1e-1)

    # ---- bf16 production path (bf16 matmul inputs, f32 epilogue) ----
    obj16, scores16, boxes16 = rpn_forward(x, params, anc_table, img_h, img_w,
                                           tile_h=8,
                                           compute_dtype=jnp.bfloat16)
    jax.block_until_ready((obj16, scores16, boxes16))
    assert jnp.allclose(obj16, obj_r, atol=5e-2)
    assert jnp.allclose(boxes16, boxes_r, atol=1.0)

    # PyTorch-parity NCHW view of the objectness logits (rpn_head output).
    pred_objectness_logits_nchw = jnp.transpose(obj, (0, 3, 1, 2))  # (B, A, H, W)

    # ---- find_top_rpn_proposals (pre-NMS top-k, sorted descending) ----
    k = min(pre_nms_topk, N)
    topk_scores, topk_idx = jax.lax.top_k(scores, k)                # descending
    topk_boxes = jnp.take_along_axis(boxes, topk_idx[..., None], axis=1)
    # TODO(synk): batched NMS + min-box-size filtering and the training losses
    # (anchor matching / subsampling) omitted — data-dependent sequential ops
    # with no clean Pallas equivalent; proposals are pre-NMS top-k by score.

    jax.block_until_ready((topk_scores, topk_boxes))
    print("KERNEL_OK")
</pallas_src>

<mosaic_0001>
module attributes {stable_mosaic.version = 11 : i64} {
  func.func @rpn_fused_kernel(%arg0: i32, %arg1: i32, %arg2: memref<1x8x18x4xf32, #tpu.memory_space<vmem>>, %arg3: memref<1x2x18x4xf32, #tpu.memory_space<vmem>>, %arg4: memref<3x12x4xf32, #tpu.memory_space<vmem>>, %arg5: memref<1x4xf32, #tpu.memory_space<vmem>>, %arg6: memref<4x128xf32, #tpu.memory_space<vmem>>, %arg7: memref<1x128xf32, #tpu.memory_space<vmem>>, %arg8: memref<8x16x12xf32, #tpu.memory_space<vmem>>, %arg9: memref<1x8x16x128xf32, #tpu.memory_space<vmem>>) attributes {dimension_semantics = [#tpu.dimension_semantics<parallel>, #tpu.dimension_semantics<parallel>], iteration_bounds = array<i64: 2, 2>, scalar_prefetch = 0 : i64, scratch_operands = 0 : i64, tpu.core_type = #tpu.core_type<tc>, window_params = [{transform_indices = @transform_0, window_bounds = array<i64: 1, 8, 18, 4>}, {transform_indices = @transform_1, window_bounds = array<i64: 1, 2, 18, 4>}, {pipeline_mode = #tpu.pipeline_mode<synchronous>, transform_indices = @transform_2, window_bounds = array<i64: 3, 12, 4>}, {pipeline_mode = #tpu.pipeline_mode<synchronous>, transform_indices = @transform_3, window_bounds = array<i64: 1, 4>}, {pipeline_mode = #tpu.pipeline_mode<synchronous>, transform_indices = @transform_4, window_bounds = array<i64: 4, 128>}, {pipeline_mode = #tpu.pipeline_mode<synchronous>, transform_indices = @transform_5, window_bounds = array<i64: 1, 128>}, {transform_indices = @transform_6, window_bounds = array<i64: 8, 16, 12>}, {transform_indices = @transform_7, window_bounds = array<i64: 1, 8, 16, 128>}]} {
    %c0 = arith.constant 0 : index
    %c0_0 = arith.constant 0 : index
    %c0_1 = arith.constant 0 : index
    %c0_2 = arith.constant 0 : index
    %0 = vector.load %arg2[%c0, %c0_0, %c0_1, %c0_2] : memref<1x8x18x4xf32, #tpu.memory_space<vmem>>, vector<1x8x18x4xf32>
    %1 = vector.shape_cast %0 : vector<1x8x18x4xf32> to vector<8x18x4xf32>
    %c0_3 = arith.constant 0 : index
    %c0_4 = arith.constant 0 : index
    %c0_5 = arith.constant 0 : index
    %c0_6 = arith.constant 0 : index
    %2 = vector.load %arg3[%c0_3, %c0_4, %c0_5, %c0_6] : memref<1x2x18x4xf32, #tpu.memory_space<vmem>>, vector<1x2x18x4xf32>
    %3 = vector.shape_cast %2 : vector<1x2x18x4xf32> to vector<2x18x4xf32>
    %4 = tpu.concatenate %1, %3 in 0 : vector<8x18x4xf32>, vector<2x18x4xf32> -> vector<10x18x4xf32>
    %5 = vector.extract_strided_slice %4 {offsets = [0, 0, 0], sizes = [10, 16, 4], strides = [1, 1, 1]} : vector<10x18x4xf32> to vector<10x16x4xf32>
    %6 = vector.extract_strided_slice %4 {offsets = [0, 1, 0], sizes = [10, 16, 4], strides = [1, 1, 1]} : vector<10x18x4xf32> to vector<10x16x4xf32>
    %7 = vector.extract_strided_slice %4 {offsets = [0, 2, 0], sizes = [10, 16, 4], strides = [1, 1, 1]} : vector<10x18x4xf32> to vector<10x16x4xf32>
    %8 = tpu.concatenate %5, %6, %7 in 2 : vector<10x16x4xf32>, vector<10x16x4xf32>, vector<10x16x4xf32> -> vector<10x16x12xf32>
    %9 = vector.extract_strided_slice %8 {offsets = [0, 0, 0], sizes = [8, 16, 12], strides = [1, 1, 1]} : vector<10x16x12xf32> to vector<8x16x12xf32>
    %10 = vector.shape_cast %9 : vector<8x16x12xf32> to vector<128x12xf32>
    %c0_7 = arith.constant 0 : index
    %c0_8 = arith.constant 0 : index
    %c0_9 = arith.constant 0 : index
    %11 = vector.load %arg4[%c0_7, %c0_8, %c0_9] : memref<3x12x4xf32, #tpu.memory_space<vmem>>, vector<1x12x4xf32>
    %12 = vector.shape_cast %11 : vector<1x12x4xf32> to vector<12x4xf32>
    %cst = arith.constant dense<0.000000e+00> : vector<128x4xf32>
    %13 = tpu.matmul %10, %12, %cst {dimension_numbers = #tpu.dot_dimension_numbers<[1], [0], [0], [1], [0, 0, 1, 1], [], []>} : vector<128x12xf32>, vector<12x4xf32>, vector<128x4xf32> -> vector<128x4xf32>
    %14 = vector.extract_strided_slice %8 {offsets = [1, 0, 0], sizes = [8, 16, 12], strides = [1, 1, 1]} : vector<10x16x12xf32> to vector<8x16x12xf32>
    %15 = vector.shape_cast %14 : vector<8x16x12xf32> to vector<128x12xf32>
    %c1 = arith.constant 1 : index
    %c0_10 = arith.constant 0 : index
    %c0_11 = arith.constant 0 : index
    %16 = vector.load %arg4[%c1, %c0_10, %c0_11] : memref<3x12x4xf32, #tpu.memory_space<vmem>>, vector<1x12x4xf32>
    %17 = vector.shape_cast %16 : vector<1x12x4xf32> to vector<12x4xf32>
    %cst_12 = arith.constant dense<0.000000e+00> : vector<128x4xf32>
    %18 = tpu.matmul %15, %17, %cst_12 {dimension_numbers = #tpu.dot_dimension_numbers<[1], [0], [0], [1], [0, 0, 1, 1], [], []>} : vector<128x12xf32>, vector<12x4xf32>, vector<128x4xf32> -> vector<128x4xf32>
    %19 = arith.addf %13, %18 : vector<128x4xf32>
    %20 = vector.extract_strided_slice %8 {offsets = [2, 0, 0], sizes = [8, 16, 12], strides = [1, 1, 1]} : vector<10x16x12xf32> to vector<8x16x12xf32>
    %21 = vector.shape_cast %20 : vector<8x16x12xf32> to vector<128x12xf32>
    %c2 = arith.constant 2 : index
    %c0_13 = arith.constant 0 : index
    %c0_14 = arith.constant 0 : index
    %22 = vector.load %arg4[%c2, %c0_13, %c0_14] : memref<3x12x4xf32, #tpu.memory_space<vmem>>, vector<1x12x4xf32>
    %23 = vector.shape_cast %22 : vector<1x12x4xf32> to vector<12x4xf32>
    %cst_15 = arith.constant dense<0.000000e+00> : vector<128x4xf32>
    %24 = tpu.matmul %21, %23, %cst_15 {dimension_numbers = #tpu.dot_dimension_numbers<[1], [0], [0], [1], [0, 0, 1, 1], [], []>} : vector<128x12xf32>, vector<12x4xf32>, vector<128x4xf32> -> vector<128x4xf32>
    %25 = arith.addf %19, %24 : vector<128x4xf32>
    %c0_16 = arith.constant 0 : index
    %c0_17 = arith.constant 0 : index
    %26 = vector.load %arg5[%c0_16, %c0_17] : memref<1x4xf32, #tpu.memory_space<vmem>>, vector<1x4xf32>
    %27 = vector.broadcast %26 : vector<1x4xf32> to vector<128x4xf32>
    %28 = arith.addf %25, %27 : vector<128x4xf32>
    %cst_18 = arith.constant 0.000000e+00 : f32
    %29 = vector.broadcast %cst_18 : f32 to vector<128x4xf32>
    %30 = arith.maximumf %28, %29 : vector<128x4xf32>
    %c0_19 = arith.constant 0 : index
    %c0_20 = arith.constant 0 : index
    %31 = vector.load %arg6[%c0_19, %c0_20] : memref<4x128xf32, #tpu.memory_space<vmem>>, vector<4x128xf32>
    %cst_21 = arith.constant dense<0.000000e+00> : vector<128x128xf32>
    %32 = tpu.matmul %30, %31, %cst_21 {dimension_numbers = #tpu.dot_dimension_numbers<[1], [0], [0], [1], [0, 0, 1, 1], [], []>} : vector<128x4xf32>, vector<4x128xf32>, vector<128x128xf32> -> vector<128x128xf32>
    %c0_22 = arith.constant 0 : index
    %c0_23 = arith.constant 0 : index
    %33 = vector.load %arg7[%c0_22, %c0_23] : memref<1x128xf32, #tpu.memory_space<vmem>>, vector<1x128xf32>
    %34 = vector.broadcast %33 : vector<1x128xf32> to vector<128x128xf32>
    %35 = arith.addf %32, %34 : vector<128x128xf32>
    %c0_24 = arith.constant 0 : index
    %c0_25 = arith.constant 0 : index
    %c0_26 = arith.constant 0 : index
    %36 = vector.load %arg8[%c0_24, %c0_25, %c0_26] : memref<8x16x12xf32, #tpu.memory_space<vmem>>, vector<8x16x12xf32>
    %37 = vector.shape_cast %36 : vector<8x16x12xf32> to vector<128x12xf32>
    %38 = vector.extract_strided_slice %37 {offsets = [0, 6], sizes = [128, 6], strides = [1, 1]} : vector<128x12xf32> to vector<128x6xf32>
    %39 = vector.extract_strided_slice %37 {offsets = [0, 0], sizes = [128, 6], strides = [1, 1]} : vector<128x12xf32> to vector<128x6xf32>
    %40 = arith.subf %38, %39 : vector<128x6xf32>
    %41 = vector.extract_strided_slice %37 {offsets = [0, 0], sizes = [128, 6], strides = [1, 1]} : vector<128x12xf32> to vector<128x6xf32>
    %cst_27 = arith.constant 5.000000e-01 : f32
    %42 = vector.broadcast %cst_27 : f32 to vector<128x6xf32>
    %43 = arith.mulf %42, %40 : vector<128x6xf32>
    %44 = arith.addf %41, %43 : vector<128x6xf32>
    %45 = vector.extract_strided_slice %35 {offsets = [0, 0], sizes = [128, 6], strides = [1, 1]} : vector<128x128xf32> to vector<128x6xf32>
    %46 = vector.extract_strided_slice %35 {offsets = [0, 6], sizes = [128, 6], strides = [1, 1]} : vector<128x128xf32> to vector<128x6xf32>
    %cst_28 = arith.constant 4.13516665 : f32
    %47 = vector.broadcast %cst_28 : f32 to vector<128x6xf32>
    %48 = arith.minimumf %46, %47 : vector<128x6xf32>
    %49 = arith.mulf %45, %40 : vector<128x6xf32>
    %50 = arith.addf %49, %44 : vector<128x6xf32>
    %51 = math.exp %48 : vector<128x6xf32>
    %52 = arith.mulf %51, %40 : vector<128x6xf32>
    %cst_29 = arith.constant 5.000000e-01 : f32
    %53 = vector.broadcast %cst_29 : f32 to vector<128x6xf32>
    %54 = arith.mulf %53, %52 : vector<128x6xf32>
    %55 = arith.subf %50, %54 : vector<128x6xf32>
    %cst_30 = arith.constant 5.000000e-01 : f32
    %56 = vector.broadcast %cst_30 : f32 to vector<128x6xf32>
    %57 = arith.mulf %56, %52 : vector<128x6xf32>
    %58 = arith.addf %50, %57 : vector<128x6xf32>
    %59 = vector.extract_strided_slice %55 {offsets = [0, 0], sizes = [128, 3], strides = [1, 1]} : vector<128x6xf32> to vector<128x3xf32>
    %cst_31 = arith.constant 0.000000e+00 : f32
    %cst_32 = arith.constant 1.280000e+02 : f32
    %60 = vector.broadcast %cst_31 : f32 to vector<128x3xf32>
    %61 = arith.maximumf %60, %59 : vector<128x3xf32>
    %62 = vector.broadcast %cst_32 : f32 to vector<128x3xf32>
    %63 = arith.minimumf %62, %61 : vector<128x3xf32>
    %64 = vector.extract_strided_slice %55 {offsets = [0, 3], sizes = [128, 3], strides = [1, 1]} : vector<128x6xf32> to vector<128x3xf32>
    %cst_33 = arith.constant 0.000000e+00 : f32
    %cst_34 = arith.constant 1.280000e+02 : f32
    %65 = vector.broadcast %cst_33 : f32 to vector<128x3xf32>
    %66 = arith.maximumf %65, %64 : vector<128x3xf32>
    %67 = vector.broadcast %cst_34 : f32 to vector<128x3xf32>
    %68 = arith.minimumf %67, %66 : vector<128x3xf32>
    %69 = vector.extract_strided_slice %58 {offsets = [0, 0], sizes = [128, 3], strides = [1, 1]} : vector<128x6xf32> to vector<128x3xf32>
    %cst_35 = arith.constant 0.000000e+00 : f32
    %cst_36 = arith.constant 1.280000e+02 : f32
    %70 = vector.broadcast %cst_35 : f32 to vector<128x3xf32>
    %71 = arith.maximumf %70, %69 : vector<128x3xf32>
    %72 = vector.broadcast %cst_36 : f32 to vector<128x3xf32>
    %73 = arith.minimumf %72, %71 : vector<128x3xf32>
    %74 = vector.extract_strided_slice %58 {offsets = [0, 3], sizes = [128, 3], strides = [1, 1]} : vector<128x6xf32> to vector<128x3xf32>
    %cst_37 = arith.constant 0.000000e+00 : f32
    %cst_38 = arith.constant 1.280000e+02 : f32
    %75 = vector.broadcast %cst_37 : f32 to vector<128x3xf32>
    %76 = arith.maximumf %75, %74 : vector<128x3xf32>
    %77 = vector.broadcast %cst_38 : f32 to vector<128x3xf32>
    %78 = arith.minimumf %77, %76 : vector<128x3xf32>
    %79 = vector.extract_strided_slice %35 {offsets = [0, 12], sizes = [128, 116], strides = [1, 1]} : vector<128x128xf32> to vector<128x116xf32>
    %80 = tpu.concatenate %63, %68, %73, %78, %79 in 1 : vector<128x3xf32>, vector<128x3xf32>, vector<128x3xf32>, vector<128x3xf32>, vector<128x116xf32> -> vector<128x128xf32>
    %81 = vector.shape_cast %80 : vector<128x128xf32> to vector<8x16x128xf32>
    %c0_39 = arith.constant 0 : index
    %c0_40 = arith.constant 0 : index
    %c0_41 = arith.constant 0 : index
    %c0_42 = arith.constant 0 : index
    %82 = vector.load %arg9[%c0_39, %c0_40, %c0_41, %c0_42] : memref<1x8x16x128xf32, #tpu.memory_space<vmem>>, vector<1x8x16x128xf32>
    %83 = vector.shape_cast %82 : vector<1x8x16x128xf32> to vector<8x16x128xf32>
    %84 = vector.shape_cast %81 : vector<8x16x128xf32> to vector<1x8x16x128xf32>
    tpu.vector_store %arg9[%c0_39, %c0_40, %c0_41, %c0_42], %84 {strides = array<i32>} : memref<1x8x16x128xf32, #tpu.memory_space<vmem>>, vector<1x8x16x128xf32>,
    return
  }
  func.func @transform_0(%arg0: i32, %arg1: i32) -> (i32, i32, i32, i32) {
    %c0_i32 = arith.constant 0 : i32
    %c0_i32_0 = arith.constant 0 : i32
    %c0_i32_1 = arith.constant 0 : i32
    return %arg0, %arg1, %c0_i32, %c0_i32_0 : i32, i32, i32, i32
  }
  func.func @transform_1(%arg0: i32, %arg1: i32) -> (i32, i32, i32, i32) {
    %c1_i32 = arith.constant 1 : i32
    %0 = arith.addi %arg1, %c1_i32 : i32
    %c4_i32 = arith.constant 4 : i32
    %1 = arith.muli %0, %c4_i32 : i32
    %c0_i32 = arith.constant 0 : i32
    %c0_i32_0 = arith.constant 0 : i32
    %c0_i32_1 = arith.constant 0 : i32
    return %arg0, %1, %c0_i32, %c0_i32_0 : i32, i32, i32, i32
  }
  func.func @transform_2(%arg0: i32, %arg1: i32) -> (i32, i32, i32) {
    %c0_i32 = arith.constant 0 : i32
    %c0_i32_0 = arith.constant 0 : i32
    %c0_i32_1 = arith.constant 0 : i32
    %c0_i32_2 = arith.constant 0 : i32
    return %c0_i32, %c0_i32_0, %c0_i32_1 : i32, i32, i32
  }
  func.func @transform_3(%arg0: i32, %arg1: i32) -> (i32, i32) {
    %c0_i32 = arith.constant 0 : i32
    %c0_i32_0 = arith.constant 0 : i32
    %c0_i32_1 = arith.constant 0 : i32
    return %c0_i32, %c0_i32_0 : i32, i32
  }
  func.func @transform_4(%arg0: i32, %arg1: i32) -> (i32, i32) {
    %c0_i32 = arith.constant 0 : i32
    %c0_i32_0 = arith.constant 0 : i32
    %c0_i32_1 = arith.constant 0 : i32
    return %c0_i32, %c0_i32_0 : i32, i32
  }
  func.func @transform_5(%arg0: i32, %arg1: i32) -> (i32, i32) {
    %c0_i32 = arith.constant 0 : i32
    %c0_i32_0 = arith.constant 0 : i32
    %c0_i32_1 = arith.constant 0 : i32
    return %c0_i32, %c0_i32_0 : i32, i32
  }
  func.func @transform_6(%arg0: i32, %arg1: i32) -> (i32, i32, i32) {
    %c0_i32 = arith.constant 0 : i32
    %c0_i32_0 = arith.constant 0 : i32
    %c0_i32_1 = arith.constant 0 : i32
    return %arg1, %c0_i32, %c0_i32_0 : i32, i32, i32
  }
  func.func @transform_7(%arg0: i32, %arg1: i32) -> (i32, i32, i32, i32) {
    %c0_i32 = arith.constant 0 : i32
    %c0_i32_0 = arith.constant 0 : i32
    %c0_i32_1 = arith.constant 0 : i32
    return %arg0, %arg1, %c0_i32, %c0_i32_0 : i32, i32, i32, i32
  }
}

</mosaic_0001>

<bundles_post_ra>
// kernel: tpu_custom_call.1
= control target key start
LH: loop header
LB: loop body
LE: loop exit
PB: predicated region body
PF: predicated region fallthrough
CT: control target
= control target key end

     0   :  { %12 = vsyncpa [#allocation3], 0  ;;  %s4130_s0 = inlined_call_operand.vmem [shape: f32[2,18,18,4], index: 0, kind: input, shape index: {}]   ;;  %s4131_s1 = inlined_call_operand.vmem [shape: f32[2,18,18,4], index: 1, kind: input, shape index: {}]   ;;  %s4132_s2 = inlined_call_operand.vmem [shape: f32[3,12,4], index: 2, kind: input, shape index: {}]   ;;  %s4133_s3 = inlined_call_operand.vmem [shape: f32[1,4], index: 3, kind: input, shape index: {}]   ;;  %s4134_s4 = inlined_call_operand.vmem [shape: f32[4,128], index: 4, kind: input, shape index: {}]   ;;  %s4135_s5 = inlined_call_operand.vmem [shape: f32[1,128], index: 5, kind: input, shape index: {}]   ;;  %s4136_s6 = inlined_call_operand.vmem [shape: f32[16,16,12], index: 6, kind: input, shape index: {}]   ;;  %s4137_s7 = inlined_call_operand.hbm [shape: f32[2,16,16,128], index: 7, kind: output, shape index: {}]  }
   0x1   :  { %14 = vsyncpa [#allocation3 + $0x1], 0  ;;  %s2844_s24 = smov 0   ;;  %s2846_s25 = smov 0  }
   0x2   :  { %s2848_s26 = smov 0   ;;  %s2850_s27 = smov 0  }
   0x3   :  { %s2852_s28 = smov 0   ;;  %s2854_s29 = smov 0  }
   0x4   :  { %s2856_s30 = smov 0   ;;  %s2858_s8 = smov 0  }
   0x5 LB: > { %s2304_s9 = sadd.s32 4294967295, %s2796_s8   ;;  %s2305_s10 = sadd.s32 4294967294, %s2796_s8   ;;  %s2796_s8 = sphi %s2858_s8, %s20_s8   ;;  %s2792_s30 = sphi %s2856_s30, %s4189_s30   ;;  %s2788_s29 = sphi %s2854_s29, %s4188_s29   ;;  %s2784_s28 = sphi %s2852_s28, %s4187_s28   ;;  %s2780_s27 = sphi %s2850_s27, %s4186_s27   ;;  %s2776_s26 = sphi %s2848_s26, %s4185_s26   ;;  %s2772_s25 = sphi %s2846_s25, %s4184_s25   ;;  %s2768_s24 = sphi %s2844_s24, %s4183_s24  }
   0x6   : > { %s29_s11 = sadd.s32 1, %s2788_s29  ;;  %s32_s12 = sadd.s32 1, %s2792_s30 }
   0x7   : > { %p30_p0 = scmp.ge.s32.totalorder %s29_s11, 2  ;;  %p221_p1 = scmp.ne.s32.totalorder %s2776_s26, %s2772_s25 }
   0x8   : > { %p222_p2 = scmp.eq.s32.totalorder %s2304_s9, 3  ;;  %p227_p5 = scmp.ne.s32.totalorder %s2772_s25, %s2768_s24 }
   0x9   : > { %s4191_s11 = smov (%p30_p0, %s29_s11), 0  ;;  %s4193_s12 = smov (!%p30_p0, %s32_s12), %s2792_s30 }
   0xa   : > { %4149 = sst [smem:[#allocation5_spill]] %s4191_s11  ;;  %s207_s13 = ssub.s32 %s2788_s29, %s4191_s11 }
   0xb   : > { %p2895_p3 = por %p222_p2, %p221_p1  ;;  %p34_p4 = scmp.ge.s32.totalorder %s4193_s12, 2 }
   0xc   : > { %p228_p6 = scmp.eq.s32.totalorder %s2305_s10, 3  ;;  %p2310_p7 = scmp.ge.s32.totalorder %s2796_s8, 1 }
   0xd   : > { %s4195_s12 = smov (%p34_p4, %s4193_s12), 0  ;;  %p310_p9 = scmp.lt.s32.totalorder %s2796_s8, 5 }
   0xe   : > { %4151 = sst [smem:[#allocation6_spill]] %s4195_s12  ;;  %p2904_p8 = por %p228_p6, %p227_p5 }
   0xf   : > { %s206_s16 = ssub.s32 %s2792_s30, %s4195_s12  ;;  %s211_s17 = sadd.s32 1, %s2776_s26 }
  0x10   : > { %s208_s18 = sor.u32 %s207_s13, %s206_s16  ;;  %p311_p10 = pnand %p2310_p7, %p310_p9 }
  0x11   : > { %p209_p11 = scmp.eq.s32.totalorder %s208_s18, 0 }
  0x12   : > { %314 = sbr.rel (%p311_p10) target bundleno = 927 (0x39f), region = 48 }
  0x13   : > { %s2913_s19 = scalar_select %p209_p11, %s2776_s26, %s211_s17  }
  0x17   : > { %s2916_s20 = sshll.u32 %s2780_s27, 3  ;;  %p376_p12 = scmp.lt.s32.totalorder %s2784_s28, 1  ;;  %v2321_v0 = vld [vmem:[%s4132_s2 + $0x18] sm:$0xf]  ;;  %vm792_vm0 = vcmask 1043456   ;;  %v2320_v1 = vld [vmem:[%s4132_s2 + $0x10] sm:$0xff] }
  0x18   : > { %p378_p13 = scmp.lt.s32.totalorder %s2916_s20, 17  ;;  %2483 = vmatprep.subr.msk.mxu0 %vm792_vm0, %v2321_v0  ;;  %vm585_vm1 = vcmask 1045504   ;;  %vm474_vm2 = vcmask 1046528   ;;  %s2798_s12 = smov 8   ;;  %vm696_vm3 = vcmask 31744   ;;  %vm717_vm4 = vcmask 64512  }
  0x19   : > { %s2924_s23 = scalar_select %p376_p12, %s2784_s28, 1  ;;  %2484 = vmatpush3.msk.msra.mxu0 %vm792_vm0, %v2321_v0  ;;  %vm743_vm5 = vcmask 97280   ;;  %vm2103_vm6 = vcmask 48128   ;;  %vm2120_vm7 = vcmask 72704  }
  0x1a   : > { %s379_s9 = scalar_select %p378_p13, %s2916_s20, 17  ;;  %2485 = vmatprep.subr.mxu0 %v2320_v1 }
  0x1b   : > { %s2594_s10 = smul.u32 54, %s2924_s23  ;;  %2486 = vmatpush3.msra.mxu0 %v2320_v1  ;;  %s2411_s13 = sadd.s32 8, %s2916_s20 }
  0x1c   : > { %s2593_s17 = smul.u32 3, %s379_s9  ;;  %s2799_s9 = smov 4  }
  0x1d   : > { %p396_p0 = scmp.lt.s32.totalorder %s2411_s13, 17  ;;  %p407_p1 = scmp.lt.s32.totalorder %s2916_s20, 15 }
  0x1e   : > { %s382_s18 = sadd.s32 %s2594_s10, %s2593_s17  ;;  %s367_s23 = sand.u32 1, %s2772_s25  }
  0x1f   : > { %s2313_s21 = sshll.u32 %s382_s18, 3  ;;  %s4197_s13 = smov (!%p396_p0, %s2411_s13), 17 }
  0x20   : > { %s2938_s11 = scalar_lea.vmem %s4130_s0, %s2313_s21  ;;  %s2595_s18 = smul.u32 3, %s4197_s13 }
  0x21   : > { %v2941_v2 = vld [vmem:[%s2938_s11 + $0x18] sm:$0xff]  ;;  %v2944_v3 = vld [vmem:[%s2938_s11 + $0x20] sm:$0xff]  ;;  %v419_v4 = vld [vmem:[%s2938_s11 + $0x28] sm:$0x3]  ;;  %s4199_s20 = smov (!%p407_p1, %s2916_s20), 15  ;;  %s2397_s16 = sshll.u32 %s2784_s28, 5 }
  0x22   : > { %v591_v5 = vrot.slane %v2941_v2, 2  ;;  %v592_v6 = vrot.slane %v2944_v3, 2  ;;  %v480_v7 = vrot.slane %v2941_v2, 1  ;;  %v481_v8 = vrot.slane %v2944_v3, 1  ;;  %v2952_v9 = vld [vmem:[%s2938_s11 + $0x38] sm:$0xff]  ;;  %v2956_v13 = vld [vmem:[%s2938_s11 + $0x30] sm:$0xff]  ;;  %s400_s21 = sadd.s32 %s2595_s18, %s2594_s10 }
  0x23   : > { %v594_v10 = vrot.slane %v419_v4, 2  ;;  %v483_v11 = vrot.slane %v419_v4, 1  ;;  %v422_v12 = vld [vmem:[%s2938_s11 + $0x40] sm:$0x3]  ;;  %v486_v16 = vrot.slane %v2952_v9, 1  ;;  %v485_v20 = vrot.slane %v2956_v13, 1 }
  0x24   : > { %v593_v14 = vsel %vm585_vm1, %v591_v5, %v592_v6  ;;  %v482_v15 = vsel %vm474_vm2, %v480_v7, %v481_v8  ;;  %v488_v19 = vrot.slane %v422_v12, 1  ;;  %v597_v21 = vrot.slane %v2952_v9, 2  ;;  %v2973_v26 = vld [vmem:[%s2938_s11 + $0x50] sm:$0xff]  ;;  %v425_v27 = vld [vmem:[%s2938_s11 + $0x58] sm:$0x3]  ;;  %v2977_v28 = vld [vmem:[%s2938_s11 + $0x48] sm:$0xff] }
  0x25   : > { %640 = vrot.lane.b32.xlu1 %v593_v14, %s2798_s12  ;;  %529 = vrot.lane.b32.xlu0 %v482_v15, %s2799_s9  ;;  %v595_v17 = vsel %vm585_vm1, %v592_v6, %v594_v10  ;;  %v484_v18 = vsel %vm474_vm2, %v481_v8, %v483_v11  ;;  %v487_v23 = vsel %vm474_vm2, %v485_v20, %v486_v16  ;;  %v599_v24 = vrot.slane %v422_v12, 2  ;;  %v2992_v39 = vld [vmem:[%s2938_s11 + $0x68] sm:$0xff]  ;;  %v428_v40 = vld [vmem:[%s2938_s11 + $0x70] sm:$0x3]  ;;  %s2316_s22 = sshll.u32 %s400_s21, 3  ;;  %s2311_s10 = sshll.u32 %s367_s23, 7 }
  0x26   : > { %v489_v22 = vsel %vm474_vm2, %v486_v16, %v488_v19  ;;  %v596_v25 = vrot.slane %v2956_v13, 2  ;;  %v491_v29 = vrot.slane %v2973_v26, 1  ;;  %v493_v32 = vrot.slane %v425_v27, 1  ;;  %v2996_v41 = vld [vmem:[%s2938_s11 + $0x60] sm:$0xff]  ;;  %v2999_v42 = vld [vmem:[%s2938_s11 + $0x8] sm:$0xff]  ;;  %v3032_v62 = vld [vmem:[%s2938_s11 + $0x78] sm:$0xff]  ;;  %s3090_s13 = scalar_lea.vmem %s4131_s1, %s2316_s22 }
  0x27   : > { %v600_v30 = vsel %vm585_vm1, %v597_v21, %v599_v24  ;;  %v490_v33 = vrot.slane %v2977_v28, 1  ;;  %v602_v34 = vrot.slane %v2973_v26, 2  ;;  %v604_v35 = vrot.slane %v425_v27, 2  ;;  %v416_v43 = vld [vmem:[%s2938_s11 + $0x10] sm:$0x3]  ;;  %v3027_v60 = vld [vmem:[%s2938_s11 + $0x80] sm:$0xff] }
  0x28   : > { %v598_v31 = vsel %vm585_vm1, %v596_v25, %v597_v21  ;;  %v494_v36 = vsel %vm474_vm2, %v491_v29, %v493_v32  ;;  %v601_v38 = vrot.slane %v2977_v28, 2  ;;  %v496_v45 = vrot.slane %v2992_v39, 1  ;;  %v431_v61 = vld [vmem:[%s2938_s11 + $0x88] sm:$0x3]  ;;  %v3054_v14 = vld [vmem:[%s2938_s11 + $0x98] sm:$0xff]  ;;  %v3058_v16 = vld [vmem:[%s2938_s11 + $0x90] sm:$0xff] }
  0x29   : > { %642 = vrot.lane.b32.xlu1 %v595_v17, %s2798_s12  ;;  %531 = vrot.lane.b32.xlu0 %v484_v18, %s2799_s9  ;;  %v492_v37 = vsel %vm474_vm2, %v490_v33, %v491_v29  ;;  %v605_v44 = vsel %vm585_vm1, %v602_v34, %v604_v35  ;;  %v498_v46 = vrot.slane %v428_v40, 1  ;;  %v495_v47 = vrot.slane %v2996_v41, 1  ;;  %v3043_v6 = vld [vmem:[%s4132_s2 + $0x28] sm:$0xf]  ;;  %v434_v15 = vld [vmem:[%s2938_s11 + $0xa0] sm:$0x3] }
  0x2a   : > { %v603_v48 = vsel %vm585_vm1, %v601_v38, %v602_v34  ;;  %v476_v49 = vrot.slane %v2999_v42, 1  ;;  %v478_v50 = vrot.slane %v416_v43, 1  ;;  %v587_v51 = vrot.slane %v2999_v42, 2  ;;  %2539 = vmatprep.subr.msk.mxu0 %vm792_vm0, %v3043_v6  ;;  %v3075_v29 = vld [vmem:[%s2938_s11 + $0xb0] sm:$0xff]  ;;  %s2408_s22 = sshll.u32 %s4199_s20, 4  ;;  %s2800_s20 = smov 6  }
  0x2b   : > { %v589_v52 = vrot.slane %v416_v43, 2  ;;  %v607_v54 = vrot.slane %v2992_v39, 2  ;;  %v499_v56 = vsel %vm474_vm2, %v496_v45, %v498_v46  ;;  %v497_v57 = vsel %vm474_vm2, %v495_v47, %v496_v45  ;;  %v3099_v45 = vld [vmem:[%s3090_s13 + $0x8] sm:$0xff]  ;;  %v440_v46 = vld [vmem:[%s3090_s13 + $0x10] sm:$0x3]  ;;  %v3103_v47 = vld [vmem:[%s3090_s13] sm:$0xff] }
  0x2c   : > { %v3013_v53 = vsel %vm474_vm2, %v476_v49, %v478_v50  ;;  %v609_v58 = vrot.slane %v428_v40, 2  ;;  %v606_v59 = vrot.slane %v2996_v41, 2  ;;  %v501_v63 = vrot.slane %v3027_v60, 1  ;;  %s4078_s21 = scalar_lea.sflag [#allocation3], %s367_s23 }
  0x2d   : > { %535 = vrot.lane.b32.xlu1 %v489_v22, %s2799_s9  ;;  %533 = vrot.lane.b32.xlu0 %v487_v23, %s2799_s9  ;;  %v3021_v55 = vsel %vm585_vm1, %v587_v51, %v589_v52  ;;  %v503_v4 = vrot.slane %v431_v61, 1  ;;  %v500_v5 = vrot.slane %v3032_v62, 1  ;;  %v612_v7 = vrot.slane %v3027_v60, 2 }
  0x2e   : > { %v610_v0 = vsel %vm585_vm1, %v607_v54, %v609_v58  ;;  %v608_v1 = vsel %vm585_vm1, %v606_v59, %v607_v54  ;;  %v614_v11 = vrot.slane %v431_v61, 2  ;;  %v611_v12 = vrot.slane %v3032_v62, 2  ;;  %v739_v59 = vld [vmem:[%s4132_s2 + $0x8] sm:$0xf] }
  0x2f   : > { %v504_v8 = vsel %vm474_vm2, %v501_v63, %v503_v4  ;;  %v502_v10 = vsel %vm474_vm2, %v500_v5, %v501_v63  ;;  %v506_v17 = vrot.slane %v3054_v14, 1  ;;  %v508_v20 = vrot.slane %v434_v15, 1  ;;  %2511 = vmatprep.subr.msk.mxu1 %vm792_vm0, %v739_v59  ;;  %v738_v4 = vld [vmem:[%s4132_s2] sm:$0xff] }
  0x30   : > { %v615_v18 = vsel %vm585_vm1, %v612_v7, %v614_v11  ;;  %v613_v19 = vsel %vm585_vm1, %v611_v12, %v612_v7  ;;  %v505_v21 = vrot.slane %v3058_v16, 1  ;;  %v617_v22 = vrot.slane %v3054_v14, 2  ;;  %2512 = vmatpush3.msk.msra.mxu1 %vm792_vm0, %v739_v59  ;;  %v3140_v12 = vld [vmem:[%s3090_s13 + $0x18] sm:$0xff] }
  0x31   : > { %646 = vrot.lane.b32.xlu1 %v600_v30, %s2798_s12  ;;  %644 = vrot.lane.b32.xlu0 %v598_v31, %s2798_s12  ;;  %v509_v23 = vsel %vm474_vm2, %v506_v17, %v508_v20  ;;  %v619_v25 = vrot.slane %v434_v15, 2  ;;  %v616_v27 = vrot.slane %v3058_v16, 2  ;;  %v437_v30 = vld [vmem:[%s2938_s11 + $0xb8] sm:$0x3]  ;;  %v3079_v31 = vld [vmem:[%s2938_s11 + $0xa8] sm:$0xff]  ;;  %v511_v32 = vrot.slane %v3075_v29, 1 }
  0x32   : > { %v507_v24 = vsel %vm474_vm2, %v505_v21, %v506_v17  ;;  %v513_v35 = vrot.slane %v437_v30, 1  ;;  %v624_v43 = vrot.slane %v437_v30, 2  ;;  %v518_v54 = vrot.slane %v440_v46, 1  ;;  %2513 = vmatprep.subr.mxu1 %v738_v4  ;;  %v3143_v15 = vld [vmem:[%s3090_s13 + $0x20] sm:$0xff]  ;;  %v443_v17 = vld [vmem:[%s3090_s13 + $0x28] sm:$0x3]  ;;  %s3304_s13 = scalar_lea.vmem %s4136_s6, %s2408_s22 }
  0x33   : > { %v620_v33 = vsel %vm585_vm1, %v617_v22, %v619_v25  ;;  %v618_v34 = vsel %vm585_vm1, %v616_v27, %v617_v22  ;;  %v626_v58 = vrot.slane %v3103_v47, 2  ;;  %2514 = vmatpush3.msra.mxu1 %v738_v4  ;;  %v523_v20 = vrot.slane %v443_v17, 1 }
  0x34   : > { %v514_v38 = vsel %vm474_vm2, %v511_v32, %v513_v35  ;;  %v631_v21 = vrot.slane %v3140_v12, 2 }
  0x35   : > { %539 = vrot.lane.b32.xlu1 %v494_v36, %s2799_s9  ;;  %537 = vrot.lane.b32.xlu0 %v492_v37, %s2799_s9  ;;  %v510_v36 = vrot.slane %v3079_v31, 1  ;;  %v622_v37 = vrot.slane %v3075_v29, 2 }
  0x37   : > { %v512_v40 = vsel %vm474_vm2, %v510_v36, %v511_v32  ;;  %v625_v50 = vsel %vm585_vm1, %v622_v37, %v624_v43 }
  0x39   : > { %650 = vrot.lane.b32.xlu1 %v605_v44, %s2798_s12  ;;  %648 = vrot.lane.b32.xlu0 %v603_v48, %s2798_s12  ;;  %v621_v44 = vrot.slane %v3079_v31, 2  ;;  %v516_v48 = vrot.slane %v3099_v45, 1 }
  0x3b   : > { %v623_v52 = vsel %vm585_vm1, %v621_v44, %v622_v37  ;;  %v519_v61 = vsel %vm474_vm2, %v516_v48, %v518_v54  ;;  %v2356_v37 = vld [vmem:[%s4132_s2 + $0x20] sm:$0xff] }
  0x3d   : > { %543 = vrot.lane.b32.xlu1 %v499_v56, %s2799_s9  ;;  %541 = vrot.lane.b32.xlu0 %v497_v57, %s2799_s9  ;;  %v515_v56 = vrot.slane %v3103_v47, 1  ;;  %v3112_v57 = vld [vmem:[%s2938_s11] sm:$0xff]  ;;  %s2801_s11 = smov 122  }
  0x3e   : > { %v586_v11 = vrot.slane %v3112_v57, 2 }
  0x3f   : > { %v517_v63 = vsel %vm474_vm2, %v515_v56, %v516_v48 }
  0x41   : > { %654 = vrot.lane.b32.xlu1 %v610_v0, %s2798_s12  ;;  %652 = vrot.lane.b32.xlu0 %v608_v1, %s2798_s12  ;;  %v627_v0 = vrot.slane %v3099_v45, 2  ;;  %v475_v1 = vrot.slane %v3112_v57, 1 }
  0x43   : > { %v628_v5 = vsel %vm585_vm1, %v626_v58, %v627_v0  ;;  %v477_v7 = vsel %vm474_vm2, %v475_v1, %v476_v49  ;;  %v588_v49 = vsel %vm585_vm1, %v586_v11, %v587_v51 }
  0x45   : > { %547 = vrot.lane.b32.xlu1 %v504_v8, %s2799_s9  ;;  %545 = vrot.lane.b32.xlu0 %v502_v10, %s2799_s9  ;;  %v629_v8 = vrot.slane %v440_v46, 2 }
  0x47   : > { %v630_v10 = vsel %vm585_vm1, %v627_v0, %v629_v8 }
  0x49   : > { %658 = vrot.lane.b32.xlu1 %v615_v18, %s2798_s12  ;;  %656 = vrot.lane.b32.xlu0 %v613_v19, %s2798_s12  ;;  %v520_v18 = vrot.slane %v3140_v12, 1  ;;  %v521_v19 = vrot.slane %v3143_v15, 1 }
  0x4b   : > { %v522_v22 = vsel %vm474_vm2, %v520_v18, %v521_v19 }
  0x4d   : > { %551 = vrot.lane.b32.xlu1 %v509_v23, %s2799_s9  ;;  %549 = vrot.lane.b32.xlu0 %v507_v24, %s2799_s9  ;;  %v632_v23 = vrot.slane %v3143_v15, 2  ;;  %v634_v24 = vrot.slane %v443_v17, 2 }
  0x4f   : > { %v633_v51 = vsel %vm585_vm1, %v631_v21, %v632_v23  ;;  %v635_v25 = vsel %vm585_vm1, %v632_v23, %v634_v24 }
  0x51   : > { %662 = vrot.lane.b32.xlu1 %v620_v33, %s2798_s12  ;;  %660 = vrot.lane.b32.xlu0 %v618_v34, %s2798_s12 }
  0x55   : > { %555 = vrot.lane.b32.xlu1 %v514_v38, %s2799_s9  ;;  %553 = vrot.lane.b32.xlu0 %v512_v40, %s2799_s9 }
  0x59   : > { %666 = vrot.lane.b32.xlu1 %v625_v50, %s2798_s12  ;;  %664 = vrot.lane.b32.xlu0 %v623_v52, %s2798_s12 }
  0x5d   : > { %559 = vrot.lane.b32.xlu1 %v519_v61, %s2799_s9  ;;  %557 = vrot.lane.b32.xlu0 %v517_v63, %s2799_s9 }
  0x61   : > { %668 = vrot.lane.b32.xlu0 %v628_v5, %s2798_s12  ;;  %525 = vrot.lane.b32.xlu1 %v477_v7, %s2799_s9 }
  0x65   : > { %670 = vrot.lane.b32.xlu0 %v630_v10, %s2798_s12  ;;  %527 = vrot.lane.b32.xlu1 %v3013_v53, %s2799_s9  ;;  %v524_v53 = vsel %vm474_vm2, %v521_v19, %v523_v20 }
  0x69   : > { %636 = vrot.lane.b32.xlu0 %v588_v49, %s2798_s12  ;;  %638 = vrot.lane.b32.xlu1 %v3021_v55, %s2798_s12 }
  0x6d   : > { %561 = vrot.lane.b32.xlu0 %v522_v22, %s2799_s9  ;;  %563 = vrot.lane.b32.xlu1 %v524_v53, %s2799_s9 }
  0x71   : > { %672 = vrot.lane.b32.xlu0 %v633_v51, %s2798_s12  ;;  %674 = vrot.lane.b32.xlu1 %v635_v25, %s2798_s12 }
  0x97   : > { %v641_v55 = vpop.permute.xlu1 %640  ;;  %v530_v27 = vpop.permute.xlu0 %529 }
  0x98   : > { %v699_v30 = vsel %vm696_vm3, %v2941_v2, %v530_v27 }
  0x99   : > { %v3170_v32 = vsel %vm717_vm4, %v699_v30, %v641_v55 }
  0x9a   : > { %2487 = vmatprep.mubr.msk.f32.mxu0 %vm743_vm5, %v3170_v32 }
  0x9b   : > { %v643_v33 = vpop.permute.xlu1 %642  ;;  %v532_v34 = vpop.permute.xlu0 %531 }
  0x9c   : > { %v700_v35 = vsel %vm696_vm3, %v2944_v3, %v532_v34 }
  0x9d   : > { %v3177_v36 = vsel %vm717_vm4, %v700_v35, %v643_v33 }
  0x9e   : > { %2488 = vmatmul.mubr.msk.f32.vlgmr.msra.gmra.mxu0 %vm743_vm5, %v3177_v36 }
  0x9f   : > { %v536_v2 = vpop.permute.xlu1 %535  ;;  %v534_v38 = vpop.permute.xlu0 %533  ;;  %2540 = vmatpush3.msk.msra.mxu0 %vm792_vm0, %v3043_v6 }
  0xa0   : > { %2541 = vmatprep.subr.mxu0 %v2356_v37  ;;  %v702_v3 = vsel %vm696_vm3, %v2952_v9, %v536_v2  ;;  %v701_v40 = vsel %vm696_vm3, %v2956_v13, %v534_v38 }
  0xa1   : > { %2542 = vmatpush3.msra.mxu0 %v2356_v37 }
  0xa3   : > { %v647_v43 = vpop.permute.xlu1 %646  ;;  %v645_v44 = vpop.permute.xlu0 %644 }
  0xa4   : > { %v3191_v46 = vsel %vm717_vm4, %v702_v3, %v647_v43  ;;  %v3194_v48 = vsel %vm717_vm4, %v701_v40, %v645_v44 }
  0xa5   : > { %2490 = vmatprep.mubr.msk.f32.mxu0 %vm743_vm5, %v3194_v48 }
  0xa6   : > { %2491 = vmatmul.mubr.msk.f32.gmra.mxu0 %vm743_vm5, %v3191_v46 }
  0xa7   : > { %v540_v6 = vpop.permute.xlu1 %539  ;;  %v538_v50 = vpop.permute.xlu0 %537 }
  0xa8   : > { %v704_v9 = vsel %vm696_vm3, %v2973_v26, %v540_v6  ;;  %v703_v13 = vsel %vm696_vm3, %v2977_v28, %v538_v50  ;;  %v3350_v6 = vld [vmem:[%s3304_s13 + $0x20] sm:$0xff] }
  0xab   : > { %v651_v52 = vpop.permute.xlu1 %650  ;;  %v649_v54 = vpop.permute.xlu0 %648 }
  0xac   : > { %v3205_v56 = vsel %vm717_vm4, %v704_v9, %v651_v52  ;;  %v3208_v58 = vsel %vm717_vm4, %v703_v13, %v649_v54  ;;  %v3365_v9 = vld [vmem:[%s3304_s13 + $0x38] sm:$0xff]  ;;  %v3374_v54 = vld [vmem:[%s3304_s13 + $0x30] sm:$0xff] }
  0xad   : > { %2493 = vmatprep.mubr.msk.f32.mxu0 %vm743_vm5, %v3208_v58 }
  0xae   : > { %2494 = vmatmul.mubr.msk.f32.gmra.mxu0 %vm743_vm5, %v3205_v56 }
  0xaf   : > { %v544_v59 = vpop.permute.xlu1 %543  ;;  %v542_v61 = vpop.permute.xlu0 %541 }
  0xb0   : > { %v706_v26 = vsel %vm696_vm3, %v2992_v39, %v544_v59  ;;  %v705_v28 = vsel %vm696_vm3, %v2996_v41, %v542_v61 }
  0xb3   : > { %v655_v63 = vpop.permute.xlu1 %654  ;;  %v653_v0 = vpop.permute.xlu0 %652 }
  0xb4   : > { %v3219_v1 = vsel %vm717_vm4, %v706_v26, %v655_v63  ;;  %v3222_v4 = vsel %vm717_vm4, %v705_v28, %v653_v0  ;;  %v3405_v26 = vld [vmem:[%s3304_s13 + $0x58] sm:$0xff]  ;;  %v3412_v28 = vld [vmem:[%s3304_s13 + $0x50] sm:$0xff]  ;;  %v3415_v63 = vld [vmem:[%s3304_s13 + $0x68] sm:$0xff] }
  0xb5   : > { %2496 = vmatprep.mubr.msk.f32.mxu0 %vm743_vm5, %v3222_v4  ;;  %4153 = vst [vmem:[#allocation7_spill] sm:$0xff] %v3412_v28  ;;  %4154 = vst [vmem:[#allocation8_spill] sm:$0xff] %v3415_v63  ;;  %v3423_v0 = vld [vmem:[%s3304_s13 + $0x60] sm:$0xff] }
  0xb6   : > { %2497 = vmatmul.mubr.msk.f32.gmra.mxu0 %vm743_vm5, %v3219_v1  ;;  %4155 = vst [vmem:[#allocation9_spill] sm:$0xff] %v3423_v0 }
  0xb7   : > { %v548_v5 = vpop.permute.xlu1 %547  ;;  %v546_v7 = vpop.permute.xlu0 %545 }
  0xb8   : > { %v708_v39 = vsel %vm696_vm3, %v3027_v60, %v548_v5  ;;  %v707_v41 = vsel %vm696_vm3, %v3032_v62, %v546_v7  ;;  %v1307_v5 = vld [vmem:[%s4134_s4] sm:$0xf] }
  0xb9   : > { %2567 = vmatprep.subr.msk.mxu1 %vm792_vm0, %v1307_v5 }
  0xbb   : > { %v659_v8 = vpop.permute.xlu1 %658  ;;  %v657_v10 = vpop.permute.xlu0 %656 }
  0xbc   : > { %v3233_v11 = vsel %vm717_vm4, %v708_v39, %v659_v8  ;;  %v3236_v17 = vsel %vm717_vm4, %v707_v41, %v657_v10 }
  0xbd   : > { %2499 = vmatprep.mubr.msk.f32.mxu0 %vm743_vm5, %v3236_v17 }
  0xbe   : > { %2500 = vmatmul.mubr.msk.f32.gmra.mxu0 %vm743_vm5, %v3233_v11 }
  0xbf   : > { %v552_v49 = vpop.permute.xlu1 %551  ;;  %v550_v18 = vpop.permute.xlu0 %549 }
  0xc0   : > { %v710_v60 = vsel %vm696_vm3, %v3054_v14, %v552_v49  ;;  %v709_v62 = vsel %vm696_vm3, %v3058_v16, %v550_v18 }
  0xc3   : > { %v663_v19 = vpop.permute.xlu1 %662  ;;  %v661_v20 = vpop.permute.xlu0 %660 }
  0xc4   : > { %v3247_v21 = vsel %vm717_vm4, %v710_v60, %v663_v19  ;;  %v3250_v22 = vsel %vm717_vm4, %v709_v62, %v661_v20 }
  0xc5   : > { %2502 = vmatprep.mubr.msk.f32.mxu0 %vm743_vm5, %v3250_v22 }
  0xc6   : > { %2503 = vmatmul.mubr.msk.f32.gmra.mxu0 %vm743_vm5, %v3247_v21 }
  0xc7   : > { %v556_v53 = vpop.permute.xlu1 %555  ;;  %v554_v23 = vpop.permute.xlu0 %553 }
  0xc8   : > { %v712_v14 = vsel %vm696_vm3, %v3075_v29, %v556_v53  ;;  %v711_v16 = vsel %vm696_vm3, %v3079_v31, %v554_v23 }
  0xcb   : > { %v667_v24 = vpop.permute.xlu1 %666  ;;  %v665_v51 = vpop.permute.xlu0 %664 }
  0xcc   : > { %v3261_v25 = vsel %vm717_vm4, %v712_v14, %v667_v24  ;;  %v3264_v55 = vsel %vm717_vm4, %v711_v16, %v665_v51 }
  0xcd   : > { %2505 = vmatprep.mubr.msk.f32.mxu0 %vm743_vm5, %v3264_v55 }
  0xce   : > { %2506 = vmatmul.mubr.msk.f32.gmra.mxu0 %vm743_vm5, %v3261_v25 }
  0xcf   : > { %v560_v27 = vpop.permute.xlu1 %559  ;;  %v558_v30 = vpop.permute.xlu0 %557 }
  0xd0   : > { %v713_v29 = vsel %vm696_vm3, %v3103_v47, %v558_v30  ;;  %v714_v35 = vsel %vm696_vm3, %v3099_v45, %v560_v27 }
  0xd3   : > { %v669_v31 = vpop.permute.xlu0 %668  ;;  %v526_v33 = vpop.permute.xlu1 %525 }
  0xd4   : > { %v734_v34 = vsel %vm717_vm4, %v713_v29, %v669_v31  ;;  %v697_v47 = vsel %vm696_vm3, %v3112_v57, %v526_v33  ;;  %v3314_v57 = vld [vmem:[%s3304_s13] sm:$0xff] }
  0xd5   : > { %2508 = vmatprep.mubr.msk.f32.mxu0 %vm743_vm5, %v734_v34  ;;  %1543 = vrot.lane.b32.xlu0 %v3314_v57, %s2800_s20 }
  0xd7   : > { %v671_v37 = vpop.permute.xlu0 %670  ;;  %v528_v2 = vpop.permute.xlu1 %527 }
  0xd8   : > { %v3277_v38 = vsel %vm717_vm4, %v714_v35, %v671_v37  ;;  %v698_v3 = vsel %vm696_vm3, %v2999_v42, %v528_v2  ;;  %v3311_v42 = vld [vmem:[%s3304_s13 + $0x8] sm:$0xff] }
  0xd9   : > { %2509 = vmatmul.mubr.msk.f32.gmra.mxu0 %vm743_vm5, %v3277_v38  ;;  %1545 = vrot.lane.b32.xlu1 %v3311_v42, %s2800_s20 }
  0xda   : > { %2543 = vmatprep.mubr.msk.f32.mxu0 %vm743_vm5, %v3194_v48 }
  0xdb   : > { %v637_v40 = vpop.permute.xlu0 %636  ;;  %v639_v45 = vpop.permute.xlu1 %638 }
  0xdc   : > { %v719_v43 = vsel %vm717_vm4, %v698_v3, %v639_v45  ;;  %v718_v44 = vsel %vm717_vm4, %v697_v47, %v637_v40 }
  0xdd   : > { %2515 = vmatprep.mubr.msk.f32.mxu1 %vm743_vm5, %v718_v44  ;;  %2544 = vmatmul.mubr.msk.f32.vlgmr.msra.gmra.mxu0 %vm743_vm5, %v3191_v46 }
  0xde   : > { %2516 = vmatmul.mubr.msk.f32.vlgmr.msra.gmra.mxu1 %vm743_vm5, %v719_v43  ;;  %2546 = vmatprep.mubr.msk.f32.mxu0 %vm743_vm5, %v3208_v58 }
  0xdf   : > { %2518 = vmatprep.mubr.msk.f32.mxu1 %vm743_vm5, %v3170_v32  ;;  %v3329_v32 = vld [vmem:[%s3304_s13 + $0x18] sm:$0xff]  ;;  %v564_v50 = vpop.permute.xlu1 %563  ;;  %2568 = vmatpush3.msk.msra.mxu1 %vm792_vm0, %v1307_v5 }
  0xe0   : > { %1549 = vrot.lane.b32.xlu1 %v3329_v32, %s2800_s20 }
  0xe1   : > { %2547 = vmatmul.mubr.msk.f32.gmra.mxu0 %vm743_vm5, %v3205_v56 }
  0xe2   : > { %2519 = vmatmul.mubr.msk.f32.gmra.mxu1 %vm743_vm5, %v3177_v36  ;;  %2549 = vmatprep.mubr.msk.f32.mxu0 %vm743_vm5, %v3222_v4  ;;  %v3336_v36 = vld [vmem:[%s3304_s13 + $0x10] sm:$0xff] }
  0xe3   : > { %2521 = vmatprep.mubr.msk.f32.mxu1 %vm743_vm5, %v3194_v48  ;;  %v3339_v48 = vld [vmem:[%s3304_s13 + $0x28] sm:$0xff]  ;;  %1547 = vrot.lane.b32.xlu0 %v3336_v36, %s2800_s20  ;;  %v675_v61 = vpop.permute.xlu1 %674 }
  0xe4   : > { %1553 = vrot.lane.b32.xlu1 %v3339_v48, %s2800_s20 }
  0xe5   : > { %2550 = vmatmul.mubr.msk.f32.gmra.mxu0 %vm743_vm5, %v3219_v1 }
  0xe6   : > { %2522 = vmatmul.mubr.msk.f32.gmra.mxu1 %vm743_vm5, %v3191_v46  ;;  %2552 = vmatprep.mubr.msk.f32.mxu0 %vm743_vm5, %v3236_v17  ;;  %v562_v46 = vpop.permute.xlu0 %561 }
  0xe7   : > { %2524 = vmatprep.mubr.msk.f32.mxu1 %vm743_vm5, %v3208_v58  ;;  %1551 = vrot.lane.b32.xlu0 %v3350_v6, %s2800_s20  ;;  %v715_v13 = vsel %vm696_vm3, %v3140_v12, %v562_v46  ;;  %v3387_v12 = vld [vmem:[%s3304_s13 + $0x40] sm:$0xff]  ;;  %v716_v58 = vsel %vm696_vm3, %v3143_v15, %v564_v50 }
  0xe8   : > { %1557 = vrot.lane.b32.xlu1 %v3365_v9, %s2800_s20  ;;  %v737_v15 = vsel %vm717_vm4, %v716_v58, %v675_v61 }
  0xe9   : > { %2553 = vmatmul.mubr.msk.f32.gmra.mxu0 %vm743_vm5, %v3233_v11 }
  0xea   : > { %2525 = vmatmul.mubr.msk.f32.gmra.mxu1 %vm743_vm5, %v3205_v56  ;;  %2555 = vmatprep.mubr.msk.f32.mxu0 %vm743_vm5, %v3250_v22  ;;  %v673_v52 = vpop.permute.xlu0 %672  ;;  %v3377_v56 = vld [vmem:[%s3304_s13 + $0x48] sm:$0xff] }
  0xeb   : > { %2527 = vmatprep.mubr.msk.f32.mxu1 %vm743_vm5, %v3222_v4  ;;  %1555 = vrot.lane.b32.xlu0 %v3374_v54, %s2800_s20  ;;  %v736_v59 = vsel %vm717_vm4, %v715_v13, %v673_v52  ;;  %v3435_v4 = vld [vmem:[%s3304_s13 + $0x70] sm:$0xff] }
  0xec   : > { %1561 = vrot.lane.b32.xlu1 %v3377_v56, %s2800_s20  ;;  %4157 = vst [vmem:[#allocation11_spill] sm:$0xff] %v3435_v4 }
  0xed   : > { %2556 = vmatmul.mubr.msk.f32.gmra.mxu0 %vm743_vm5, %v3247_v21 }
  0xee   : > { %2528 = vmatmul.mubr.msk.f32.gmra.mxu1 %vm743_vm5, %v3219_v1  ;;  %2558 = vmatprep.mubr.msk.f32.mxu0 %vm743_vm5, %v3264_v55  ;;  %v3430_v1 = vld [vmem:[%s3304_s13 + $0x78] sm:$0xff]  ;;  %s3958_s13 = scalar_lea.vmem [#allocation2], %s2311_s10  ;;  %s2802_s10 = smov [#allocation2]  }
  0xef   : > { %2530 = vmatprep.mubr.msk.f32.mxu1 %vm743_vm5, %v3236_v17  ;;  %1559 = vrot.lane.b32.xlu0 %v3387_v12, %s2800_s20  ;;  %4156 = vst [vmem:[#allocation10_spill] sm:$0xff] %v3430_v1  ;;  %s2186_s17 = sshll.u32 %s3958_s13, 4  ;;  %s4071_s17 = int_to_ptr.vmem [resolvable:$true] %s2186_s17 }
  0xf0   : > { %1565 = vrot.lane.b32.xlu1 %v3405_v26, %s2800_s20  ;;  %s2704_s22 = scalar_lea.vmem %s4071_s17, 2048 }
  0xf1   : > { %2559 = vmatmul.mubr.msk.f32.gmra.mxu0 %vm743_vm5, %v3261_v25  ;;  %p2705_p2 = scmp.ne.s32.totalorder %s4071_s17, %s2704_s22 }
  0xf2   : > { %2561 = vmatprep.mubr.msk.f32.mxu0 %vm743_vm5, %v734_v34  ;;  %2531 = vmatmul.mubr.msk.f32.gmra.mxu1 %vm743_vm5, %v3233_v11 }
  0xf3   : > { %2533 = vmatprep.mubr.msk.f32.mxu1 %vm743_vm5, %v3250_v22  ;;  %1563 = vrot.lane.b32.xlu0 %v3412_v28, %s2800_s20  ;;  %p2706_p4 = pnand %p2705_p2, %p2895_p3 }
  0xf4   : > { %1569 = vrot.lane.b32.xlu1 %v3415_v63, %s2800_s20 }
  0xf5   : > { %2562 = vmatmul.mubr.msk.f32.gmra.mxu0 %vm743_vm5, %v3277_v38  ;;  %p2707_p5 = pneg %p2706_p4 }
  0xf6   : > { %2534 = vmatmul.mubr.msk.f32.gmra.mxu1 %vm743_vm5, %v3247_v21  ;;  %2564 = vmatprep.mubr.msk.f32.mxu0 %vm743_vm5, %v736_v59 }
  0xf7   : > { %2536 = vmatprep.mubr.msk.f32.mxu1 %vm743_vm5, %v3264_v55  ;;  %1567 = vrot.lane.b32.xlu0 %v3423_v0, %s2800_s20 }
  0xf8   : > { %1573 = vrot.lane.b32.xlu1 %v3430_v1, %s2800_s20 }
  0xf9   : > { %2565 = vmatmul.mubr.msk.f32.gmra.mxu0 %vm743_vm5, %v737_v15 }
  0xfa   : > { %2537 = vmatmul.mubr.msk.f32.gmra.mxu1 %vm743_vm5, %v3261_v25 }
  0xfb   : > { %1571 = vrot.lane.b32.xlu0 %v3435_v4, %s2800_s20 }
 0x147   : > { %v1544_v41 = vpop.permute.xlu0 %1543 }
 0x148   : > { %v3448_v8 = vsub.f32 %v3314_v57, %v1544_v41 }
 0x14a   : > { %v1607_v17 = vmul.f32 0.5, %v3448_v8 }
 0x14b   : > { %v1546_v7 = vpop.permute.xlu1 %1545 }
 0x14c   : > { %v3445_v39 = vsub.f32 %v3311_v42, %v1546_v7  ;;  %1639 = vrot.lane.b32.xlu0 %v1607_v17, %s2801_s11 }
 0x14e   : > { %v1608_v10 = vmul.f32 0.5, %v3445_v39 }
 0x150   : > { %1641 = vrot.lane.b32.xlu1 %v1608_v10, %s2801_s11 }
 0x152   : > { %v1550_v11 = vpop.permute.xlu1 %1549 }
 0x153   : > { %v3453_v49 = vsub.f32 %v3329_v32, %v1550_v11 }
 0x155   : > { %v1548_v18 = vpop.permute.xlu0 %1547  ;;  %v1610_v62 = vmul.f32 0.5, %v3453_v49 }
 0x156   : > { %v3458_v60 = vsub.f32 %v3336_v36, %v1548_v18  ;;  %v1554_v19 = vpop.permute.xlu1 %1553 }
 0x157   : > { %v3462_v20 = vsub.f32 %v3339_v48, %v1554_v19  ;;  %1645 = vrot.lane.b32.xlu1 %v1610_v62, %s2801_s11 }
 0x158   : > { %v1609_v21 = vmul.f32 0.5, %v3458_v60 }
 0x159   : > { %v1552_v22 = vpop.permute.xlu0 %1551  ;;  %v1612_v23 = vmul.f32 0.5, %v3462_v20 }
 0x15a   : > { %v3467_v53 = vsub.f32 %v3350_v6, %v1552_v22  ;;  %1643 = vrot.lane.b32.xlu0 %v1609_v21, %s2801_s11  ;;  %v1558_v14 = vpop.permute.xlu1 %1557 }
 0x15b   : > { %v3472_v16 = vsub.f32 %v3365_v9, %v1558_v14  ;;  %1649 = vrot.lane.b32.xlu1 %v1612_v23, %s2801_s11 }
 0x15c   : > { %v1611_v24 = vmul.f32 0.5, %v3467_v53 }
 0x15d   : > { %v1556_v51 = vpop.permute.xlu0 %1555  ;;  %v1614_v55 = vmul.f32 0.5, %v3472_v16 }
 0x15e   : > { %v3477_v25 = vsub.f32 %v3374_v54, %v1556_v51  ;;  %1647 = vrot.lane.b32.xlu0 %v1611_v24, %s2801_s11  ;;  %v1562_v27 = vpop.permute.xlu1 %1561  ;;  %v2489_v44 = vpop.f32.mrf.mxu0 }
 0x15f   : > { %v3482_v30 = vsub.f32 %v3377_v56, %v1562_v27  ;;  %1653 = vrot.lane.b32.xlu1 %v1614_v55, %s2801_s11 }
 0x160   : > { %v1613_v29 = vmul.f32 0.5, %v3477_v25  ;;  %v862_v61 = vpop.f32.mrf.mxu0 }
 0x161   : > { %v1560_v31 = vpop.permute.xlu0 %1559  ;;  %v1616_v34 = vmul.f32 0.5, %v3482_v30 }
 0x162   : > { %v3487_v33 = vsub.f32 %v3387_v12, %v1560_v31  ;;  %1651 = vrot.lane.b32.xlu0 %v1613_v29, %s2801_s11  ;;  %v1566_v35 = vpop.permute.xlu1 %1565 }
 0x163   : > { %v3492_v37 = vsub.f32 %v3405_v26, %v1566_v35  ;;  %1657 = vrot.lane.b32.xlu1 %v1616_v34, %s2801_s11 }
 0x164   : > { %v1615_v2 = vmul.f32 0.5, %v3487_v33 }
 0x165   : > { %v1564_v38 = vpop.permute.xlu0 %1563  ;;  %v1618_v3 = vmul.f32 0.5, %v3492_v37 }
 0x166   : > { %v3497_v47 = vsub.f32 %v3412_v28, %v1564_v38  ;;  %1655 = vrot.lane.b32.xlu0 %v1615_v2, %s2801_s11  ;;  %v1570_v40 = vpop.permute.xlu1 %1569  ;;  %v2492_v41 = vpop.f32.mrf.mxu0 }
 0x167   : > { %v3502_v45 = vsub.f32 %v3415_v63, %v1570_v40  ;;  %1661 = vrot.lane.b32.xlu1 %v1618_v3, %s2801_s11  ;;  %v3575_v3 = vld [vmem:[%s4133_s3] ss:$0 sm:$0xff] }
 0x168   : > { %v1617_v43 = vmul.f32 0.5, %v3497_v47  ;;  %v872_v11 = vpop.f32.mrf.mxu0 }
 0x169   : > { %v1568_v46 = vpop.permute.xlu0 %1567  ;;  %v1620_v13 = vmul.f32 0.5, %v3502_v45 }
 0x16a   : > { %v3507_v50 = vsub.f32 %v3423_v0, %v1568_v46  ;;  %1659 = vrot.lane.b32.xlu0 %v1617_v43, %s2801_s11  ;;  %v1574_v52 = vpop.permute.xlu1 %1573 }
 0x16b   : > { %v3512_v58 = vsub.f32 %v3430_v1, %v1574_v52  ;;  %1665 = vrot.lane.b32.xlu1 %v1620_v13, %s2801_s11 }
 0x16c   : > { %v1619_v59 = vmul.f32 0.5, %v3507_v50 }
 0x16d   : > { %v1572_v15 = vpop.permute.xlu0 %1571  ;;  %v1622_v7 = vmul.f32 0.5, %v3512_v58 }
 0x16e   : > { %v3517_v5 = vsub.f32 %v3435_v4, %v1572_v15  ;;  %1663 = vrot.lane.b32.xlu0 %v1619_v59, %s2801_s11  ;;  %v2495_v17 = vpop.f32.mrf.mxu0 }
 0x16f   : > { %1669 = vrot.lane.b32.xlu1 %v1622_v7, %s2801_s11 }
 0x170   : > { %v1621_v10 = vmul.f32 0.5, %v3517_v5  ;;  %v882_v18 = vpop.f32.mrf.mxu0 }
 0x172   : > { %1667 = vrot.lane.b32.xlu0 %v1621_v10, %s2801_s11 }
 0x173   : > { %1737 = vrot.lane.b32.xlu1 %v3445_v39, %s2801_s11 }
 0x176   : > { %1735 = vrot.lane.b32.xlu0 %v3448_v8, %s2801_s11  ;;  %v2498_v62 = vpop.f32.mrf.mxu0 }
 0x177   : > { %1741 = vrot.lane.b32.xlu1 %v3453_v49, %s2801_s11 }
 0x178   : > { %v892_v19 = vpop.f32.mrf.mxu0 }
 0x17a   : > { %1739 = vrot.lane.b32.xlu0 %v3458_v60, %s2801_s11 }
 0x17b   : > { %1745 = vrot.lane.b32.xlu1 %v3462_v20, %s2801_s11 }
 0x17e   : > { %1743 = vrot.lane.b32.xlu0 %v3467_v53, %s2801_s11  ;;  %v3538_v21 = vpop.f32.mrf.mxu0 }
 0x17f   : > { %1749 = vrot.lane.b32.xlu1 %v3472_v16, %s2801_s11 }
 0x180   : > { %v3544_v22 = vpop.f32.mrf.mxu0 }
 0x182   : > { %1747 = vrot.lane.b32.xlu0 %v3477_v25, %s2801_s11 }
 0x183   : > { %1753 = vrot.lane.b32.xlu1 %v3482_v30, %s2801_s11 }
 0x186   : > { %1751 = vrot.lane.b32.xlu0 %v3487_v33, %s2801_s11  ;;  %v3548_v23 = vpop.f32.mrf.mxu0 }
 0x187   : > { %1757 = vrot.lane.b32.xlu1 %v3492_v37, %s2801_s11 }
 0x188   : > { %v3554_v14 = vpop.f32.mrf.mxu0 }
 0x18a   : > { %1755 = vrot.lane.b32.xlu0 %v3497_v47, %s2801_s11 }
 0x18b   : > { %1761 = vrot.lane.b32.xlu1 %v3502_v45, %s2801_s11 }
 0x18e   : > { %v3558_v24 = vpop.f32.mrf.mxu0  ;;  %1759 = vrot.lane.b32.xlu0 %v3507_v50, %s2801_s11 }
 0x18f   : > { %1765 = vrot.lane.b32.xlu1 %v3512_v58, %s2801_s11 }
 0x190   : > { %v3564_v51 = vpop.f32.mrf.mxu0 }
 0x192   : > { %1763 = vrot.lane.b32.xlu0 %v3517_v5, %s2801_s11 }
 0x199   : > { %v3568_v55 = vpop.f32.mrf.mxu0 }
 0x19b   : > { %v3570_v27 = vpop.f32.mrf.mxu0 }
 0x19d   : > { %v2545_v29 = vpop.f32.mrf.mxu0 }
 0x19e   : > { %v2517_v31 = vpop.f32.mrf.mxu1 }
 0x19f   : > { %v1022_v34 = vadd.f32 %v2517_v31, %v2489_v44  ;;  %v1173_v35 = vpop.f32.mrf.mxu0 }
 0x1a0   : > { %v1016_v2 = vpop.f32.mrf.mxu1 }
 0x1a1   : > { %v1253_v38 = vadd.f32 %v2545_v29, %v1022_v34  ;;  %v1017_v40 = vadd.f32 %v1016_v2, %v862_v61  ;;  %v2548_v43 = vpop.f32.mrf.mxu0 }
 0x1a2   : > { %v2520_v46 = vpop.f32.mrf.mxu1 }
 0x1a3   : > { %v1252_v13 = vadd.f32 %v1173_v35, %v1017_v40  ;;  %v1032_v52 = vadd.f32 %v2520_v46, %v2492_v41  ;;  %v1183_v59 = vpop.f32.mrf.mxu0  ;;  %v1276_v15 = vadd.f32 %v3575_v3, %v1253_v38 }
 0x1a4   : > { %v1026_v7 = vpop.f32.mrf.mxu1 }
 0x1a5   : > { %v1275_v10 = vadd.f32 %v3575_v3, %v1252_v13  ;;  %v1255_v44 = vadd.f32 %v2548_v43, %v1032_v52  ;;  %v1027_v31 = vadd.f32 %v1026_v7, %v872_v11  ;;  %v2551_v4 = vpop.f32.mrf.mxu0  ;;  %v1292_v28 = vmax.f32 %v1276_v15, 0.0 }
 0x1a6   : > { %v2523_v29 = vpop.f32.mrf.mxu1 }
 0x1a7   : > { %v1291_v34 = vmax.f32 %v1275_v10, 0.0  ;;  %v1254_v1 = vadd.f32 %v1183_v59, %v1027_v31  ;;  %v1042_v0 = vadd.f32 %v2523_v29, %v2495_v17  ;;  %v1193_v63 = vpop.f32.mrf.mxu0  ;;  %v1278_v61 = vadd.f32 %v3575_v3, %v1255_v44 }
 0x1a8   : > { %v1036_v2 = vpop.f32.mrf.mxu1 }
 0x1a9   : > { %v1277_v41 = vadd.f32 %v3575_v3, %v1254_v1  ;;  %v1257_v35 = vadd.f32 %v2551_v4, %v1042_v0  ;;  %v1037_v40 = vadd.f32 %v1036_v2, %v882_v18  ;;  %v2554_v38 = vpop.f32.mrf.mxu0  ;;  %2569 = vmatprep.mubr.msk.f32.mxu1 %vm696_vm3, %v1291_v34  ;;  %v1294_v17 = vmax.f32 %v1278_v61, 0.0 }
 0x1aa   : > { %v2526_v46 = vpop.f32.mrf.mxu1  ;;  %2570 = vmatmul.mubr.msk.f32.vlgmr.msra.gmra.mxu1 %vm696_vm3, %v1292_v28 }
 0x1ab   : > { %v1293_v11 = vmax.f32 %v1277_v41, 0.0  ;;  %v1256_v43 = vadd.f32 %v1193_v63, %v1037_v40  ;;  %v1052_v13 = vadd.f32 %v2526_v46, %v2498_v62  ;;  %v1203_v52 = vpop.f32.mrf.mxu0  ;;  %v1280_v59 = vadd.f32 %v3575_v3, %v1257_v35 }
 0x1ac   : > { %v1046_v15 = vpop.f32.mrf.mxu1 }
 0x1ad   : > { %v1279_v7 = vadd.f32 %v3575_v3, %v1256_v43  ;;  %v1259_v10 = vadd.f32 %v2554_v38, %v1052_v13  ;;  %v1047_v1 = vadd.f32 %v1046_v15, %v892_v19  ;;  %v2557_v0 = vpop.f32.mrf.mxu0  ;;  %2572 = vmatprep.mubr.msk.f32.mxu1 %vm696_vm3, %v1293_v11  ;;  %v1296_v44 = vmax.f32 %v1280_v59, 0.0 }
 0x1ae   : > { %v2529_v4 = vpop.f32.mrf.mxu1  ;;  %2573 = vmatmul.mubr.msk.f32.gmra.mxu1 %vm696_vm3, %v1294_v17 }
 0x1af   : > { %v1295_v18 = vmax.f32 %v1279_v7, 0.0  ;;  %v1258_v28 = vadd.f32 %v1203_v52, %v1047_v1  ;;  %v1062_v63 = vadd.f32 %v2529_v4, %v3538_v21  ;;  %v1213_v62 = vpop.f32.mrf.mxu0  ;;  %v1282_v31 = vadd.f32 %v3575_v3, %v1259_v10 }
 0x1b0   : > { %v1056_v29 = vpop.f32.mrf.mxu1 }
 0x1b1   : > { %v1281_v34 = vadd.f32 %v3575_v3, %v1258_v28  ;;  %v1261_v61 = vadd.f32 %v2557_v0, %v1062_v63  ;;  %v1057_v19 = vadd.f32 %v1056_v29, %v3544_v22  ;;  %v2560_v2 = vpop.f32.mrf.mxu0  ;;  %2575 = vmatprep.mubr.msk.f32.mxu1 %vm696_vm3, %v1295_v18  ;;  %v1298_v46 = vmax.f32 %v1282_v31, 0.0 }
 0x1b2   : > { %v2532_v41 = vpop.f32.mrf.mxu1  ;;  %2576 = vmatmul.mubr.msk.f32.gmra.mxu1 %vm696_vm3, %v1296_v44 }
 0x1b3   : > { %v1297_v35 = vmax.f32 %v1281_v34, 0.0  ;;  %v1260_v40 = vadd.f32 %v1213_v62, %v1057_v19  ;;  %v1072_v21 = vadd.f32 %v2532_v41, %v3548_v23  ;;  %v1223_v38 = vpop.f32.mrf.mxu0  ;;  %v1284_v11 = vadd.f32 %v3575_v3, %v1261_v61 }
 0x1b4   : > { %v1066_v43 = vpop.f32.mrf.mxu1 }
 0x1b5   : > { %v1283_v13 = vadd.f32 %v3575_v3, %v1260_v40  ;;  %v1263_v52 = vadd.f32 %v2560_v2, %v1072_v21  ;;  %v1067_v22 = vadd.f32 %v1066_v43, %v3554_v14  ;;  %v2563_v17 = vpop.f32.mrf.mxu0  ;;  %2578 = vmatprep.mubr.msk.f32.mxu1 %vm696_vm3, %v1297_v35  ;;  %v1300_v1 = vmax.f32 %v1284_v11, 0.0 }
 0x1b6   : > { %v2535_v59 = vpop.f32.mrf.mxu1  ;;  %2579 = vmatmul.mubr.msk.f32.gmra.mxu1 %vm696_vm3, %v1298_v46 }
 0x1b7   : > { %v1299_v15 = vmax.f32 %v1283_v13, 0.0  ;;  %v1262_v7 = vadd.f32 %v1223_v38, %v1067_v22  ;;  %v1082_v23 = vadd.f32 %v2535_v59, %v3558_v24  ;;  %v1233_v10 = vpop.f32.mrf.mxu0  ;;  %v1286_v0 = vadd.f32 %v3575_v3, %v1263_v52 }
 0x1b8   : > { %v1076_v4 = vpop.f32.mrf.mxu1 }
 0x1b9   : > { %v1285_v18 = vadd.f32 %v3575_v3, %v1262_v7  ;;  %v1265_v28 = vadd.f32 %v2563_v17, %v1082_v23  ;;  %v1077_v14 = vadd.f32 %v1076_v4, %v3564_v51  ;;  %2581 = vmatprep.mubr.msk.f32.mxu1 %vm696_vm3, %v1299_v15  ;;  %v2566_v63 = vpop.f32.mrf.mxu0  ;;  %v1302_v29 = vmax.f32 %v1286_v0, 0.0 }
 0x1ba   : > { %v2538_v62 = vpop.f32.mrf.mxu1  ;;  %2582 = vmatmul.mubr.msk.f32.gmra.mxu1 %vm696_vm3, %v1300_v1 }
 0x1bb   : > { %v1301_v44 = vmax.f32 %v1285_v18, 0.0  ;;  %v1264_v31 = vadd.f32 %v1233_v10, %v1077_v14  ;;  %v1092_v24 = vadd.f32 %v2538_v62, %v3568_v55  ;;  %v1288_v34 = vadd.f32 %v3575_v3, %v1265_v28  ;;  %v1243_v51 = vpop.f32.mrf.mxu0 }
 0x1bc   : > { %v1086_v61 = vpop.f32.mrf.mxu1 }
 0x1bd   : > { %v1287_v19 = vadd.f32 %v3575_v3, %v1264_v31  ;;  %v1267_v2 = vadd.f32 %v2566_v63, %v1092_v24  ;;  %v1087_v41 = vadd.f32 %v1086_v61, %v3570_v27  ;;  %2584 = vmatprep.mubr.msk.f32.mxu1 %vm696_vm3, %v1301_v44  ;;  %v1304_v21 = vmax.f32 %v1288_v34, 0.0  ;;  %v3620_v27 = vld [vmem:[%s4135_s5] ss:$0 sm:$0xff] }
 0x1be   : > { %2585 = vmatmul.mubr.msk.f32.gmra.mxu1 %vm696_vm3, %v1302_v29 }
 0x1bf   : > { %v1303_v35 = vmax.f32 %v1287_v19, 0.0  ;;  %v1266_v40 = vadd.f32 %v1243_v51, %v1087_v41  ;;  %v1290_v38 = vadd.f32 %v3575_v3, %v1267_v2 }
 0x1c1   : > { %v1289_v55 = vadd.f32 %v3575_v3, %v1266_v40  ;;  %2587 = vmatprep.mubr.msk.f32.mxu1 %vm696_vm3, %v1303_v35  ;;  %v1306_v11 = vmax.f32 %v1290_v38, 0.0 }
 0x1c2   : > { %2588 = vmatmul.mubr.msk.f32.gmra.mxu1 %vm696_vm3, %v1304_v21 }
 0x1c3   : > { %v1305_v46 = vmax.f32 %v1289_v55, 0.0 }
 0x1c5   : > { %2590 = vmatprep.mubr.msk.f32.mxu1 %vm696_vm3, %v1305_v46 }
 0x1c6   : > { %2591 = vmatmul.mubr.msk.f32.gmra.mxu1 %vm696_vm3, %v1306_v11 }
 0x26a   : > { %v2571_v43 = vpop.f32.mrf.mxu1 }
 0x26b   : > { %v3623_v13 = vadd.f32 %v2571_v43, %v3620_v27 }
 0x26c   : > { %v1432_v3 = vpop.f32.mrf.mxu1 }
 0x26d   : > { %v1704_v52 = vmin.f32 %v3623_v13, 4.1351666  ;;  %v3627_v22 = vadd.f32 %v3620_v27, %v1432_v3 }
 0x26e   : > { %v2574_v17 = vpop.f32.mrf.mxu1 }
 0x26f   : > { %v1817_v59 = vmul.f32 1.442695, %v1704_v52  ;;  %v1703_v15 = vmin.f32 %v3627_v22, 4.1351666  ;;  %v3631_v7 = vadd.f32 %v2574_v17, %v3620_v27 }
 0x270   : > { %v1442_v23 = vpop.f32.mrf.mxu1 }
 0x271   : > { %2672 = vpow2.f32 %v1817_v59  ;;  %v1815_v10 = vmul.f32 1.442695, %v1703_v15  ;;  %v3634_v1 = vadd.f32 %v3620_v27, %v1442_v23  ;;  %v1706_v0 = vmin.f32 %v3631_v7, 4.1351666 }
 0x272   : > { %v2577_v4 = vpop.f32.mrf.mxu1 }
 0x273   : > { %2674 = vpow2.f32 %v1815_v10  ;;  %v1705_v18 = vmin.f32 %v3634_v1, 4.1351666  ;;  %v3639_v28 = vadd.f32 %v2577_v4, %v3620_v27  ;;  %v1821_v14 = vmul.f32 1.442695, %v1706_v0 }
 0x274   : > { %v1452_v63 = vpop.f32.mrf.mxu1 }
 0x275   : > { %v1819_v62 = vmul.f32 1.442695, %v1705_v18  ;;  %v1708_v44 = vmin.f32 %v3639_v28, 4.1351666  ;;  %v3643_v31 = vadd.f32 %v3620_v27, %v1452_v63  ;;  %2676 = vpow2.f32 %v1821_v14 }
 0x276   : > { %v2580_v24 = vpop.f32.mrf.mxu1 }
 0x277   : > { %2678 = vpow2.f32 %v1819_v62  ;;  %v1825_v29 = vmul.f32 1.442695, %v1708_v44  ;;  %v1707_v34 = vmin.f32 %v3643_v31, 4.1351666  ;;  %v3647_v61 = vadd.f32 %v2580_v24, %v3620_v27 }
 0x278   : > { %v1462_v19 = vpop.f32.mrf.mxu1 }
 0x279   : > { %2680 = vpow2.f32 %v1825_v29  ;;  %v1823_v2 = vmul.f32 1.442695, %v1707_v34  ;;  %v3650_v41 = vadd.f32 %v3620_v27, %v1462_v19  ;;  %v1710_v51 = vmin.f32 %v3647_v61, 4.1351666 }
 0x27a   : > { %v2583_v35 = vpop.f32.mrf.mxu1 }
 0x27b   : > { %2682 = vpow2.f32 %v1823_v2  ;;  %v1709_v40 = vmin.f32 %v3650_v41, 4.1351666  ;;  %v3655_v21 = vadd.f32 %v2583_v35, %v3620_v27  ;;  %v1829_v38 = vmul.f32 1.442695, %v1710_v51 }
 0x27c   : > { %v1472_v55 = vpop.f32.mrf.mxu1 }
 0x27d   : > { %v1827_v46 = vmul.f32 1.442695, %v1709_v40  ;;  %v1712_v11 = vmin.f32 %v3655_v21, 4.1351666  ;;  %v3659_v43 = vadd.f32 %v3620_v27, %v1472_v55  ;;  %2684 = vpow2.f32 %v1829_v38 }
 0x27e   : > { %v2673_v3 = vpop.eup %2672  ;;  %v2586_v52 = vpop.f32.mrf.mxu1 }
 0x27f   : > { %2686 = vpow2.f32 %v1827_v46  ;;  %v1833_v17 = vmul.f32 1.442695, %v1712_v11  ;;  %v1711_v59 = vmin.f32 %v3659_v43, 4.1351666  ;;  %v3663_v23 = vadd.f32 %v2586_v52, %v3620_v27 }
 0x280   : > { %v2675_v15 = vpop.eup %2674  ;;  %v1482_v10 = vpop.f32.mrf.mxu1  ;;  %v1848_v0 = vmul.f32 %v2673_v3, %v3445_v39 }
 0x281   : > { %2688 = vpow2.f32 %v1833_v17  ;;  %v1831_v4 = vmul.f32 1.442695, %v1711_v59  ;;  %v3667_v18 = vadd.f32 %v3620_v27, %v1482_v10  ;;  %v1714_v14 = vmin.f32 %v3663_v23, 4.1351666 }
 0x282   : > { %v2589_v63 = vpop.f32.mrf.mxu1  ;;  %v1864_v62 = vmul.f32 0.5, %v1848_v0  ;;  %v1847_v44 = vmul.f32 %v2675_v15, %v3448_v8  ;;  %v2677_v24 = vpop.eup %2676 }
 0x283   : > { %2690 = vpow2.f32 %v1831_v4  ;;  %v1713_v29 = vmin.f32 %v3667_v18, 4.1351666  ;;  %v3673_v34 = vadd.f32 %v2589_v63, %v3620_v27  ;;  %v1837_v39 = vmul.f32 1.442695, %v1714_v14 }
 0x284   : > { %v2679_v19 = vpop.eup %2678  ;;  %1897 = vrot.lane.b32.xlu1 %v1864_v62, %s2801_s11  ;;  %v1492_v2 = vpop.f32.mrf.mxu1  ;;  %v1863_v51 = vmul.f32 0.5, %v1847_v44  ;;  %v1850_v35 = vmul.f32 %v2677_v24, %v3453_v49 }
 0x285   : > { %v1835_v40 = vmul.f32 1.442695, %v1713_v29  ;;  %v1716_v38 = vmin.f32 %v3673_v34, 4.1351666  ;;  %v3679_v8 = vadd.f32 %v3620_v27, %v1492_v2  ;;  %2692 = vpow2.f32 %v1837_v39 }
 0x286   : > { %v2681_v55 = vpop.eup %2680  ;;  %1895 = vrot.lane.b32.xlu0 %v1863_v51, %s2801_s11  ;;  %v2592_v46 = vpop.f32.mrf.mxu1  ;;  %v1866_v11 = vmul.f32 0.5, %v1850_v35  ;;  %v1849_v3 = vmul.f32 %v2679_v19, %v3458_v60 }
 0x287   : > { %2694 = vpow2.f32 %v1835_v40  ;;  %v1841_v52 = vmul.f32 1.442695, %v1716_v38  ;;  %v1715_v17 = vmin.f32 %v3679_v8, 4.1351666  ;;  %v3685_v49 = vadd.f32 %v2592_v46, %v3620_v27 }
 0x288   : > { %v2683_v59 = vpop.eup %2682  ;;  %1901 = vrot.lane.b32.xlu1 %v1866_v11, %s2801_s11  ;;  %v1502_v15 = vpop.f32.mrf.mxu1  ;;  %v1865_v10 = vmul.f32 0.5, %v1849_v3  ;;  %v1852_v0 = vmul.f32 %v2681_v55, %v3462_v20 }
 0x289   : > { %4158 = vst [vmem:[#allocation12_spill] sm:$0xff] %v3685_v49  ;;  %2696 = vpow2.f32 %v1841_v52  ;;  %v1839_v4 = vmul.f32 1.442695, %v1715_v17  ;;  %v3690_v14 = vadd.f32 %v3620_v27, %v1502_v15  ;;  %v1718_v60 = vmin.f32 %v3685_v49, 4.1351666 }
 0x28a   : > { %1899 = vrot.lane.b32.xlu0 %v1865_v10, %s2801_s11  ;;  %v1868_v63 = vmul.f32 0.5, %v1852_v0  ;;  %v1851_v62 = vmul.f32 %v2683_v59, %v3467_v53  ;;  %v2685_v44 = vpop.eup %2684 }
 0x28b   : > { %4159 = vst [vmem:[#allocation13_spill] sm:$0xff] %v3690_v14  ;;  %2698 = vpow2.f32 %v1839_v4  ;;  %v1717_v24 = vmin.f32 %v3690_v14, 4.1351666  ;;  %v1845_v19 = vmul.f32 1.442695, %v1718_v60  ;;  %v1854_v39 = vmul.f32 %v2685_v44, %v3472_v16  ;;  %v1640_v60 = vpop.permute.xlu0 %1639 }
 0x28c   : > { %v2687_v29 = vpop.eup %2686  ;;  %1905 = vrot.lane.b32.xlu1 %v1868_v63, %s2801_s11  ;;  %v1867_v20 = vmul.f32 0.5, %v1851_v62 }
 0x28d   : > { %v1843_v27 = vmul.f32 1.442695, %v1717_v24  ;;  %v1853_v2 = vmul.f32 %v2687_v29, %v3477_v25  ;;  %2700 = vpow2.f32 %v1845_v19  ;;  %v1870_v35 = vmul.f32 0.5, %v1854_v39 }
 0x28e   : > { %v2689_v51 = vpop.eup %2688  ;;  %1903 = vrot.lane.b32.xlu0 %v1867_v20, %s2801_s11 }
 0x28f   : > { %2702 = vpow2.f32 %v1843_v27  ;;  %v1869_v53 = vmul.f32 0.5, %v1853_v2  ;;  %v1856_v40 = vmul.f32 %v2689_v51, %v3482_v30  ;;  %v1644_v19 = vpop.permute.xlu0 %1643 }
 0x290   : > { %v2691_v38 = vpop.eup %2690  ;;  %1909 = vrot.lane.b32.xlu1 %v1870_v35, %s2801_s11  ;;  %v1689_v49 = vadd.f32 %v1644_v19, %v3336_v36 }
 0x291   : > { %v1872_v55 = vmul.f32 0.5, %v1856_v40  ;;  %v1855_v46 = vmul.f32 %v2691_v38, %v3487_v33  ;;  %v1642_v33 = vpop.permute.xlu1 %1641 }
 0x292   : > { %1907 = vrot.lane.b32.xlu0 %v1869_v53, %s2801_s11  ;;  %v2693_v16 = vpop.eup %2692 }
 0x293   : > { %v1871_v11 = vmul.f32 0.5, %v1855_v46  ;;  %v1858_v3 = vmul.f32 %v2693_v16, %v3492_v37  ;;  %v1648_v20 = vpop.permute.xlu0 %1647 }
 0x294   : > { %v2695_v25 = vpop.eup %2694  ;;  %1913 = vrot.lane.b32.xlu1 %v1872_v55, %s2801_s11 }
 0x295   : > { %v1857_v52 = vmul.f32 %v2695_v25, %v3497_v47  ;;  %v1874_v30 = vmul.f32 0.5, %v1858_v3 }
 0x296   : > { %v2697_v17 = vpop.eup %2696  ;;  %1911 = vrot.lane.b32.xlu0 %v1871_v11, %s2801_s11 }
 0x297   : > { %v1873_v59 = vmul.f32 0.5, %v1857_v52  ;;  %v1860_v15 = vmul.f32 %v2697_v17, %v3502_v45  ;;  %v1646_v45 = vpop.permute.xlu1 %1645  ;;  %v1652_v27 = vpop.permute.xlu0 %1651 }
 0x298   : > { %v2699_v10 = vpop.eup %2698  ;;  %1917 = vrot.lane.b32.xlu1 %v1874_v30, %s2801_s11  ;;  %v1690_v14 = vadd.f32 %v1646_v45, %v3329_v32 }
 0x299   : > { %v1876_v0 = vmul.f32 0.5, %v1860_v15  ;;  %v1859_v4 = vmul.f32 %v2699_v10, %v3507_v50 }
 0x29a   : > { %1915 = vrot.lane.b32.xlu0 %v1873_v59, %s2801_s11  ;;  %v2701_v37 = vpop.eup %2700 }
 0x29b   : > { %v1875_v63 = vmul.f32 0.5, %v1859_v4  ;;  %v1862_v62 = vmul.f32 %v2701_v37, %v3512_v58  ;;  %v1650_v50 = vpop.permute.xlu1 %1649  ;;  %v3720_v51 = vpop.permute.xlu0 %1655  ;;  %v1688_v37 = vadd.f32 %v1642_v33, %v3311_v42 }
 0x29c   : > { %v2703_v47 = vpop.eup %2702  ;;  %1921 = vrot.lane.b32.xlu1 %v1876_v0, %s2801_s11 }
 0x29d   : > { %v1861_v44 = vmul.f32 %v2703_v47, %v3517_v5  ;;  %v1878_v24 = vmul.f32 0.5, %v1862_v62  ;;  %v1687_v62 = vadd.f32 %v1640_v60, %v3314_v57 }
 0x29e   : > { %1919 = vrot.lane.b32.xlu0 %v1875_v63, %s2801_s11 }
 0x29f   : > { %v1877_v29 = vmul.f32 0.5, %v1861_v44  ;;  %v1654_v39 = vpop.permute.xlu1 %1653  ;;  %v3724_v5 = vpop.permute.xlu0 %1659 }
 0x2a0   : > { %1925 = vrot.lane.b32.xlu1 %v1878_v24, %s2801_s11 }
 0x2a2   : > { %1923 = vrot.lane.b32.xlu0 %v1877_v29, %s2801_s11 }
 0x2a3   : > { %v3718_v2 = vpop.permute.xlu1 %1657  ;;  %v3728_v53 = vpop.permute.xlu0 %1663 }
 0x2a7   : > { %v3722_v58 = vpop.permute.xlu1 %1661  ;;  %v3732_v38 = vpop.permute.xlu0 %1667 }
 0x2a8   : > { %4161 = vst [vmem:[#allocation15_spill] sm:$0xff] %v3732_v38 }
 0x2ab   : > { %v3726_v35 = vpop.permute.xlu1 %1665  ;;  %v1736_v46 = vpop.permute.xlu0 %1735 }
 0x2ac   : > { %v1783_v44 = vmul.f32 %v1736_v46, %v3627_v22 }
 0x2ae   : > { %v3759_v42 = vadd.f32 %v1783_v44, %v1687_v62 }
 0x2af   : > { %v3730_v40 = vpop.permute.xlu1 %1669  ;;  %v1740_v11 = vpop.permute.xlu0 %1739 }
 0x2b0   : > { %4160 = vst [vmem:[#allocation14_spill] sm:$0xff] %v3730_v40  ;;  %v1785_v33 = vmul.f32 %v1740_v11, %v3634_v1 }
 0x2b3   : > { %v1738_v55 = vpop.permute.xlu1 %1737  ;;  %v1744_v3 = vpop.permute.xlu0 %1743 }
 0x2b4   : > { %v1784_v63 = vmul.f32 %v1738_v55, %v3623_v13  ;;  %v1692_v55 = vadd.f32 %v1650_v50, %v3339_v48  ;;  %v3780_v48 = vadd.f32 %v1785_v33, %v1689_v49  ;;  %v1787_v44 = vmul.f32 %v1744_v3, %v3643_v31 }
 0x2b6   : > { %v3752_v29 = vadd.f32 %v1784_v63, %v1688_v37  ;;  %v1694_v63 = vadd.f32 %v1654_v39, %v3365_v9  ;;  %v1693_v39 = vadd.f32 %v1652_v27, %v3374_v54 }
 0x2b7   : > { %v1742_v16 = vpop.permute.xlu1 %1741  ;;  %v1748_v17 = vpop.permute.xlu0 %1747 }
 0x2b8   : > { %v1786_v38 = vmul.f32 %v1742_v16, %v3631_v7  ;;  %v1691_v16 = vadd.f32 %v1648_v20, %v3350_v6  ;;  %v1789_v3 = vmul.f32 %v1748_v17, %v3650_v41  ;;  %v1695_v17 = vadd.f32 %v3720_v51, %v3387_v12 }
 0x2ba   : > { %v3775_v11 = vadd.f32 %v1786_v38, %v1690_v14 }
 0x2bb   : > { %v1746_v25 = vpop.permute.xlu1 %1745  ;;  %v3734_v59 = vpop.permute.xlu0 %1751 }
 0x2bc   : > { %v1788_v32 = vmul.f32 %v1746_v25, %v3639_v28  ;;  %v1791_v12 = vmul.f32 %v3734_v59, %v3659_v43 }
 0x2be   : > { %v3782_v62 = vadd.f32 %v1788_v32, %v1692_v55 }
 0x2bf   : > { %v1750_v52 = vpop.permute.xlu1 %1749  ;;  %v3738_v10 = vpop.permute.xlu0 %1755 }
 0x2c0   : > { %v1790_v20 = vmul.f32 %v1750_v52, %v3647_v61  ;;  %v3816_v52 = vadd.f32 %v1789_v3, %v1693_v39 }
 0x2c3   : > { %v1754_v30 = vpop.permute.xlu1 %1753  ;;  %v3742_v4 = vpop.permute.xlu0 %1759 }
 0x2c4   : > { %v1792_v9 = vmul.f32 %v1754_v30, %v3655_v21 }
 0x2c7   : > { %v3736_v15 = vpop.permute.xlu1 %1757  ;;  %v3750_v24 = vpop.permute.xlu0 %1763 }
 0x2cb   : > { %v3740_v0 = vpop.permute.xlu1 %1761 }
 0x2cf   : > { %v3746_v47 = vpop.permute.xlu1 %1765 }
 0x2f6   : > { %v3757_v40 = vpop.permute.xlu1 %1897 }
 0x2f7   : > { %v1944_v57 = vsub.f32 %v3752_v29, %v3757_v40  ;;  %v1960_v60 = vadd.f32 %v3757_v40, %v3752_v29 }
 0x2f8   : > { %v3768_v45 = vpop.permute.xlu0 %1895 }
 0x2f9   : > { %v2008_v36 = vmax.f32 %v1960_v60, 0.0  ;;  %v1959_v46 = vadd.f32 %v3768_v45, %v3759_v42  ;;  %v4169_v60 = vld [vmem:[#allocation12_spill] sm:$0xff] }
 0x2fa   : > { %v3777_v37 = vpop.permute.xlu1 %1901  ;;  %v1798_v19 = vmul.f32 %v3746_v47, %v4169_v60 }
 0x2fb   : > { %v2024_v50 = vmin.f32 %v2008_v36, 128.0  ;;  %v2007_v25 = vmax.f32 %v1959_v46, 0.0  ;;  %v1962_v6 = vadd.f32 %v3777_v37, %v3775_v11  ;;  %v1696_v46 = vadd.f32 %v3718_v2, %v3377_v56 }
 0x2fc   : > { %v3789_v14 = vpop.permute.xlu0 %1899 }
 0x2fd   : > { %v2023_v38 = vmin.f32 %v2007_v25, 128.0  ;;  %v1961_v49 = vadd.f32 %v3789_v14, %v3780_v48  ;;  %2057 = vrot.lane.b32.xlu1 %v2024_v50, %s2800_s20  ;;  %v2010_v33 = vmax.f32 %v1962_v6, 0.0  ;;  %v3808_v50 = vadd.f32 %v1787_v44, %v1691_v16 }
 0x2fe   : > { %v3799_v55 = vpop.permute.xlu1 %1905  ;;  %v3814_v25 = vadd.f32 %v1790_v20, %v1694_v63  ;;  %v1698_v63 = vadd.f32 %v3722_v58, %v3405_v26  ;;  %v1794_v44 = vmul.f32 %v3736_v15, %v3663_v23  ;;  %v4163_v58 = vld [vmem:[#allocation8_spill] sm:$0xff]  ;;  %v1793_v16 = vmul.f32 %v3738_v10, %v3667_v18 }
 0x2ff   : > { %v2009_v32 = vmax.f32 %v1961_v49, 0.0  ;;  %v1964_v36 = vadd.f32 %v3799_v55, %v3782_v62  ;;  %2055 = vrot.lane.b32.xlu0 %v2023_v38, %s2800_s20  ;;  %v2026_v54 = vmin.f32 %v2010_v33, 128.0  ;;  %v1700_v15 = vadd.f32 %v3726_v35, %v4163_v58  ;;  %v4166_v58 = vld [vmem:[#allocation14_spill] sm:$0xff] }
 0x300   : > { %v3810_v27 = vpop.permute.xlu0 %1903  ;;  %v3854_v59 = vadd.f32 %v1794_v44, %v1698_v63  ;;  %v1796_v35 = vmul.f32 %v3740_v0, %v3673_v34  ;;  %v1795_v44 = vmul.f32 %v3742_v4, %v3679_v8  ;;  %v4173_v40 = vsub.f32 %v3780_v48, %v3789_v14 }
 0x301   : > { %v2025_v6 = vmin.f32 %v2009_v32, 128.0  ;;  %v2012_v49 = vmax.f32 %v1964_v36, 0.0  ;;  %v1963_v56 = vadd.f32 %v3810_v27, %v3808_v50  ;;  %2061 = vrot.lane.b32.xlu1 %v2026_v54, %s2800_s20  ;;  %v4162_v32 = vld [vmem:[#allocation7_spill] sm:$0xff]  ;;  %v3845_v54 = vadd.f32 %v1792_v9, %v1696_v46 }
 0x302   : > { %v3824_v2 = vpop.permute.xlu1 %1909  ;;  %v1697_v36 = vadd.f32 %v3724_v5, %v4162_v32  ;;  %v1977_v29 = vmax.f32 %v4173_v40, 0.0 }
 0x303   : > { %v2028_v51 = vmin.f32 %v2012_v49, 128.0  ;;  %v1966_v30 = vadd.f32 %v3824_v2, %v3814_v25  ;;  %2059 = vrot.lane.b32.xlu0 %v2025_v6, %s2800_s20  ;;  %v2011_v20 = vmax.f32 %v1963_v56, 0.0  ;;  %v3852_v49 = vadd.f32 %v1791_v12, %v1695_v17 }
 0x304   : > { %v3837_v39 = vpop.permute.xlu0 %1907  ;;  %v3884_v12 = vadd.f32 %v1793_v16, %v1697_v36  ;;  %v1993_v14 = vmin.f32 %v1977_v29, 128.0 }
 0x305   : > { %v2014_v3 = vmax.f32 %v1966_v30, 0.0  ;;  %v1965_v33 = vadd.f32 %v3837_v39, %v3816_v52  ;;  %v2027_v6 = vmin.f32 %v2011_v20, 128.0  ;;  %2065 = vrot.lane.b32.xlu1 %v2028_v51, %s2800_s20  ;;  %v4164_v51 = vld [vmem:[#allocation9_spill] sm:$0xff]  ;;  %v4177_v29 = vsub.f32 %v3816_v52, %v3837_v39 }
 0x306   : > { %v3848_v26 = vpop.permute.xlu1 %1913  ;;  %v1699_v63 = vadd.f32 %v3728_v53, %v4164_v51 }
 0x307   : > { %v2030_v56 = vmin.f32 %v2014_v3, 128.0  ;;  %v2013_v30 = vmax.f32 %v1965_v33, 0.0  ;;  %v1968_v9 = vadd.f32 %v3848_v26, %v3845_v54  ;;  %2063 = vrot.lane.b32.xlu0 %v2027_v6, %s2800_s20  ;;  %v4165_v6 = vld [vmem:[#allocation10_spill] sm:$0xff] }
 0x308   : > { %v3863_v46 = vpop.permute.xlu0 %1911  ;;  %v3893_v38 = vadd.f32 %v1795_v44, %v1699_v63 }
 0x309   : > { %v2029_v17 = vmin.f32 %v2013_v30, 128.0  ;;  %v1967_v10 = vadd.f32 %v3863_v46, %v3852_v49  ;;  %v2016_v20 = vmax.f32 %v1968_v9, 0.0  ;;  %2069 = vrot.lane.b32.xlu1 %v2030_v56, %s2800_s20  ;;  %v1702_v30 = vadd.f32 %v4166_v58, %v4165_v6  ;;  %v4167_v56 = vld [vmem:[#allocation11_spill] sm:$0xff] }
 0x30a   : > { %v3876_v3 = vpop.permute.xlu1 %1917  ;;  %v4168_v9 = vld [vmem:[#allocation15_spill] sm:$0xff] }
 0x30b   : > { %v2015_v33 = vmax.f32 %v1967_v10, 0.0  ;;  %v1970_v32 = vadd.f32 %v3876_v3, %v3854_v59  ;;  %v2032_v53 = vmin.f32 %v2016_v20, 128.0  ;;  %2067 = vrot.lane.b32.xlu0 %v2029_v17, %s2800_s20  ;;  %v1701_v51 = vadd.f32 %v4168_v9, %v4167_v56  ;;  %v4170_v20 = vld [vmem:[#allocation13_spill] sm:$0xff] }
 0x30c   : > { %v3887_v4 = vpop.permute.xlu0 %1915  ;;  %v3891_v10 = vadd.f32 %v1796_v35, %v1700_v15  ;;  %v1797_v15 = vmul.f32 %v3750_v24, %v4170_v20  ;;  %v3917_v24 = vadd.f32 %v1798_v19, %v1702_v30 }
 0x30d   : > { %v2031_v5 = vmin.f32 %v2015_v33, 128.0  ;;  %v2018_v0 = vmax.f32 %v1970_v32, 0.0  ;;  %v1953_v16 = vsub.f32 %v3884_v12, %v3887_v4  ;;  %v1969_v36 = vadd.f32 %v3887_v4, %v3884_v12  ;;  %2073 = vrot.lane.b32.xlu1 %v2032_v53, %s2800_s20 }
 0x30e   : > { %v3902_v17 = vpop.permute.xlu1 %1921  ;;  %v3922_v56 = vadd.f32 %v1797_v15, %v1701_v51 }
 0x30f   : > { %v2034_v35 = vmin.f32 %v2018_v0, 128.0  ;;  %v1956_v63 = vsub.f32 %v3891_v10, %v3902_v17  ;;  %v1972_v47 = vadd.f32 %v3902_v17, %v3891_v10  ;;  %v2017_v44 = vmax.f32 %v1969_v36, 0.0  ;;  %2071 = vrot.lane.b32.xlu0 %v2031_v5, %s2800_s20 }
 0x310   : > { %v3911_v33 = vpop.permute.xlu0 %1919 }
 0x311   : > { %v2020_v32 = vmax.f32 %v1972_v47, 0.0  ;;  %v1955_v6 = vsub.f32 %v3893_v38, %v3911_v33  ;;  %v1971_v58 = vadd.f32 %v3911_v33, %v3893_v38  ;;  %v2033_v0 = vmin.f32 %v2017_v44, 128.0  ;;  %2077 = vrot.lane.b32.xlu1 %v2034_v35, %s2800_s20 }
 0x312   : > { %v3920_v53 = vpop.permute.xlu1 %1925  ;;  %v1988_v12 = vmax.f32 %v1956_v63, 0.0 }
 0x313   : > { %v2036_v9 = vmin.f32 %v2020_v32, 128.0  ;;  %v2019_v5 = vmax.f32 %v1971_v58, 0.0  ;;  %v1974_v36 = vadd.f32 %v3920_v53, %v3917_v24  ;;  %2075 = vrot.lane.b32.xlu0 %v2033_v0, %s2800_s20  ;;  %v1976_v32 = vmax.f32 %v1944_v57, 0.0 }
 0x314   : > { %v3927_v47 = vpop.permute.xlu0 %1923  ;;  %v4171_v58 = vsub.f32 %v3759_v42, %v3768_v45  ;;  %v1958_v4 = vsub.f32 %v3917_v24, %v3920_v53  ;;  %v1987_v10 = vmax.f32 %v1955_v6, 0.0 }
 0x315   : > { %v2035_v19 = vmin.f32 %v2019_v5, 128.0  ;;  %v1973_v30 = vadd.f32 %v3927_v47, %v3922_v56  ;;  %v2022_v35 = vmax.f32 %v1974_v36, 0.0  ;;  %2081 = vrot.lane.b32.xlu1 %v2036_v9, %s2800_s20  ;;  %v1992_v9 = vmin.f32 %v1976_v32, 128.0 }
 0x316   : > { %v1975_v0 = vmax.f32 %v4171_v58, 0.0  ;;  %v4172_v5 = vsub.f32 %v3775_v11, %v3777_v37  ;;  %v4174_v11 = vsub.f32 %v3782_v62, %v3799_v55  ;;  %v4175_v32 = vsub.f32 %v3808_v50, %v3810_v27 }
 0x317   : > { %v2021_v51 = vmax.f32 %v1973_v30, 0.0  ;;  %v2038_v15 = vmin.f32 %v2022_v35, 128.0  ;;  %2079 = vrot.lane.b32.xlu0 %v2035_v19, %s2800_s20  ;;  %v1957_v17 = vsub.f32 %v3922_v56, %v3927_v47  ;;  %v2003_v56 = vmin.f32 %v1987_v10, 128.0 }
 0x318   : > { %v1978_v36 = vmax.f32 %v4172_v5, 0.0  ;;  %v1991_v30 = vmin.f32 %v1975_v0, 128.0  ;;  %v1980_v37 = vmax.f32 %v4174_v11, 0.0  ;;  %v1979_v58 = vmax.f32 %v4175_v32, 0.0 }
 0x319   : > { %v2037_v44 = vmin.f32 %v2021_v51, 128.0  ;;  %2085 = vrot.lane.b32.xlu1 %v2038_v15, %s2800_s20  ;;  %v4179_v11 = vsub.f32 %v3852_v49, %v3863_v46  ;;  %v1989_v47 = vmax.f32 %v1957_v17, 0.0 }
 0x31a   : > { %v1994_v15 = vmin.f32 %v1978_v36, 128.0  ;;  %v1996_v5 = vmin.f32 %v1980_v37, 128.0  ;;  %v4176_v36 = vsub.f32 %v3814_v25, %v3824_v2  ;;  %v1995_v40 = vmin.f32 %v1979_v58, 128.0 }
 0x31b   : > { %2083 = vrot.lane.b32.xlu0 %v2037_v44, %s2800_s20  ;;  %v1983_v37 = vmax.f32 %v4179_v11, 0.0  ;;  %s2409_s20 = sshll.u32 %s2780_s27, 4 }
 0x31c   : > { %s2183_s27 = sadd.s32 %s2409_s20, %s2397_s16  ;;  %s2708_s20 = sshll.u32 %s2802_s10, 4  ;;  %s2709_s20 = int_to_ptr.vmem [resolvable:$false] %s2708_s20 }
 0x31d   : > { %s2398_s28 = sshll.u32 %s2183_s27, 7  ;;  %s2710_s16 = scalar_lea.vmem %s2709_s20, 4096 }
 0x31e   : > { %s4067_s9 = scalar_lea.hbm %s4137_s7, %s2398_s28  ;;  %p2711_p6 = scmp.lt.s32.totalorder %s4071_s17, %s2709_s20 }
 0x31f   : > { %p2712_p7 = scmp.lt.s32.totalorder %s2710_s16, %s2704_s22 }
 0x321   : > { %p2713_p9 = por %p2712_p7, %p2711_p6 }
 0x323   : > { %p2714_p10 = pnand %p2713_p9, %p2707_p5 }
 0x36f   : > { %v2058_v19 = vpop.permute.xlu1 %2057 }
 0x370   : > { %v2105_v57 = vsel %vm2103_vm6, %v1992_v9, %v2058_v19 }
 0x371   : > { %v2122_v42 = vsel %vm2120_vm7, %v2105_v57, %v2058_v19  ;;  %v2056_v45 = vpop.permute.xlu0 %2055  ;;  %v1982_v19 = vmax.f32 %v4176_v36, 0.0  ;;  %v1981_v57 = vmax.f32 %v4177_v29, 0.0 }
 0x372   : > { %v2138_v35 = vsel %vm743_vm5, %v2122_v42, %v3623_v13  ;;  %v2104_v51 = vsel %vm2103_vm6, %v1991_v30, %v2056_v45 }
 0x373   : > { %2154 = vst [vmem:[%s3958_s13 + $0x8] sm:$0xff] %v2138_v35  ;;  %v2121_v48 = vsel %vm2120_vm7, %v2104_v51, %v2056_v45  ;;  %v2062_v13 = vpop.permute.xlu1 %2061  ;;  %v4178_v45 = vsub.f32 %v3845_v54, %v3848_v26 }
 0x374   : > { %v2137_v44 = vsel %vm743_vm5, %v2121_v48, %v3627_v22  ;;  %v2107_v62 = vsel %vm2103_vm6, %v1994_v15, %v2062_v13  ;;  %v1997_v15 = vmin.f32 %v1981_v57, 128.0 }
 0x375   : > { %2153 = vst [vmem:[%s3958_s13] sm:$0xff] %v2137_v44  ;;  %v2060_v55 = vpop.permute.xlu0 %2059  ;;  %v2124_v0 = vsel %vm2120_vm7, %v2107_v62, %v2062_v13  ;;  %v1984_v35 = vmax.f32 %v4178_v45, 0.0 }
 0x376   : > { %v2106_v9 = vsel %vm2103_vm6, %v1993_v14, %v2060_v55  ;;  %v2140_v22 = vsel %vm743_vm5, %v2124_v0, %v3631_v7  ;;  %v1998_v7 = vmin.f32 %v1982_v19, 128.0  ;;  %v2004_v19 = vmin.f32 %v1988_v12, 128.0 }
 0x377   : > { %v2123_v50 = vsel %vm2120_vm7, %v2106_v9, %v2060_v55  ;;  %2156 = vst [vmem:[%s3958_s13 + $0x18] sm:$0xff] %v2140_v22  ;;  %v2066_v30 = vpop.permute.xlu1 %2065  ;;  %v2000_v13 = vmin.f32 %v1984_v35, 128.0  ;;  %v1990_v22 = vmax.f32 %v1958_v4, 0.0 }
 0x378   : > { %v2139_v27 = vsel %vm743_vm5, %v2123_v50, %v3634_v1  ;;  %v2109_v25 = vsel %vm2103_vm6, %v1996_v5, %v2066_v30 }
 0x379   : > { %2155 = vst [vmem:[%s3958_s13 + $0x10] sm:$0xff] %v2139_v27  ;;  %v2126_v2 = vsel %vm2120_vm7, %v2109_v25, %v2066_v30  ;;  %v2064_v42 = vpop.permute.xlu0 %2063 }
 0x37a   : > { %v2142_v1 = vsel %vm743_vm5, %v2126_v2, %v3639_v28  ;;  %v2108_v51 = vsel %vm2103_vm6, %v1995_v40, %v2064_v42  ;;  %v4180_v28 = vsub.f32 %v3854_v59, %v3876_v3  ;;  %v1999_v3 = vmin.f32 %v1983_v37, 128.0 }
 0x37b   : > { %2158 = vst [vmem:[%s3958_s13 + $0x28] sm:$0xff] %v2142_v1  ;;  %v2125_v52 = vsel %vm2120_vm7, %v2108_v51, %v2064_v42  ;;  %v2070_v39 = vpop.permute.xlu1 %2069  ;;  %v2006_v40 = vmin.f32 %v1990_v22, 128.0  ;;  %v2005_v2 = vmin.f32 %v1989_v47, 128.0 }
 0x37c   : > { %v2141_v48 = vsel %vm743_vm5, %v2125_v52, %v3643_v31  ;;  %v2111_v54 = vsel %vm2103_vm6, %v1998_v7, %v2070_v39  ;;  %v1986_v26 = vmax.f32 %v4180_v28, 0.0  ;;  %v1985_v31 = vmax.f32 %v1953_v16, 0.0 }
 0x37d   : > { %2157 = vst [vmem:[%s3958_s13 + $0x20] sm:$0xff] %v2141_v48  ;;  %v2128_v14 = vsel %vm2120_vm7, %v2111_v54, %v2070_v39  ;;  %v2068_v44 = vpop.permute.xlu0 %2067 }
 0x37e   : > { %v2144_v32 = vsel %vm743_vm5, %v2128_v14, %v3647_v61  ;;  %v2110_v49 = vsel %vm2103_vm6, %v1997_v15, %v2068_v44  ;;  %v2002_v55 = vmin.f32 %v1986_v26, 128.0  ;;  %v2001_v9 = vmin.f32 %v1985_v31, 128.0 }
 0x37f   : > { %2160 = vst [vmem:[%s3958_s13 + $0x38] sm:$0xff] %v2144_v32  ;;  %v2127_v59 = vsel %vm2120_vm7, %v2110_v49, %v2068_v44  ;;  %v2074_v46 = vpop.permute.xlu1 %2073 }
 0x380   : > { %v2143_v58 = vsel %vm743_vm5, %v2127_v59, %v3650_v41  ;;  %v2113_v62 = vsel %vm2103_vm6, %v2000_v13, %v2074_v46 }
 0x381   : > { %2159 = vst [vmem:[%s3958_s13 + $0x30] sm:$0xff] %v2143_v58  ;;  %v2130_v61 = vsel %vm2120_vm7, %v2113_v62, %v2074_v46  ;;  %v2072_v0 = vpop.permute.xlu0 %2071 }
 0x382   : > { %v2146_v41 = vsel %vm743_vm5, %v2130_v61, %v3655_v21  ;;  %v2112_v16 = vsel %vm2103_vm6, %v1999_v3, %v2072_v0 }
 0x383   : > { %2162 = vst [vmem:[%s3958_s13 + $0x48] sm:$0xff] %v2146_v41  ;;  %v2129_v5 = vsel %vm2120_vm7, %v2112_v16, %v2072_v0  ;;  %v2078_v36 = vpop.permute.xlu1 %2077 }
 0x384   : > { %v2145_v63 = vsel %vm743_vm5, %v2129_v5, %v3659_v43  ;;  %v2115_v21 = vsel %vm2103_vm6, %v2002_v55, %v2078_v36 }
 0x385   : > { %2161 = vst [vmem:[%s3958_s13 + $0x40] sm:$0xff] %v2145_v63  ;;  %v2132_v24 = vsel %vm2120_vm7, %v2115_v21, %v2078_v36  ;;  %v2076_v53 = vpop.permute.xlu0 %2075 }
 0x386   : > { %v2148_v38 = vsel %vm743_vm5, %v2132_v24, %v3663_v23  ;;  %v2114_v33 = vsel %vm2103_vm6, %v2001_v9, %v2076_v53 }
 0x387   : > { %2164 = vst [vmem:[%s3958_s13 + $0x58] sm:$0xff] %v2148_v38  ;;  %v2131_v43 = vsel %vm2120_vm7, %v2114_v33, %v2076_v53  ;;  %v2082_v6 = vpop.permute.xlu1 %2081 }
 0x388   : > { %v2147_v50 = vsel %vm743_vm5, %v2131_v43, %v3667_v18  ;;  %v2117_v27 = vsel %vm2103_vm6, %v2004_v19, %v2082_v6 }
 0x389   : > { %2163 = vst [vmem:[%s3958_s13 + $0x50] sm:$0xff] %v2147_v50  ;;  %v2134_v23 = vsel %vm2120_vm7, %v2117_v27, %v2082_v6  ;;  %v2080_v30 = vpop.permute.xlu0 %2079 }
 0x38a   : > { %v2150_v29 = vsel %vm743_vm5, %v2134_v23, %v3673_v34  ;;  %v2116_v57 = vsel %vm2103_vm6, %v2003_v56, %v2080_v30 }
 0x38b   : > { %2166 = vst [vmem:[%s3958_s13 + $0x68] sm:$0xff] %v2150_v29  ;;  %v2133_v25 = vsel %vm2120_vm7, %v2116_v57, %v2080_v30  ;;  %v2086_v18 = vpop.permute.xlu1 %2085 }
 0x38c   : > { %v2149_v42 = vsel %vm743_vm5, %v2133_v25, %v3679_v8  ;;  %v2119_v7 = vsel %vm2103_vm6, %v2006_v40, %v2086_v18 }
 0x38d   : > { %2165 = vst [vmem:[%s3958_s13 + $0x60] sm:$0xff] %v2149_v42  ;;  %v2136_v34 = vsel %vm2120_vm7, %v2119_v7, %v2086_v18  ;;  %v2084_v45 = vpop.permute.xlu0 %2083 }
 0x38e   : > { %v2152_v35 = vsel %vm743_vm5, %v2136_v34, %v4169_v60  ;;  %v2118_v1 = vsel %vm2103_vm6, %v2005_v2, %v2084_v45 }
 0x38f   : > { %2168 = vst [vmem:[%s3958_s13 + $0x78] sm:$0xff] %v2152_v35  ;;  %v2135_v8 = vsel %vm2120_vm7, %v2118_v1, %v2084_v45 }
 0x390   : > { %v2151_v51 = vsel %vm743_vm5, %v2135_v8, %v4170_v20 }
 0x391   : > { %2167 = vst [vmem:[%s3958_s13 + $0x70] sm:$0xff] %v2151_v51 }
 0x392   : > { %2717 = shalt.err (!%p2714_p10)
}
 0x393   : > { %s2718_s23 = scalar_lea.hbm %s4067_s9, 2048  ;;  %s2722_s28 = scalar_lea.hbm %s4137_s7, 8192 }
 0x394   : > { %p2719_p11 = scmp.ne.s32.totalorder %s4067_s9, %s2718_s23  ;;  %p2723_p0 = scmp.lt.s32.totalorder %s4067_s9, %s4137_s7 }
 0x395   : > { %p2724_p1 = scmp.lt.s32.totalorder %s2722_s28, %s2718_s23 }
 0x396   : > { %p2720_p12 = pnand %p2719_p11, %p2895_p3 }
 0x397   : > { %p2725_p2 = por %p2724_p1, %p2723_p0 }
 0x398   : > { %p2721_p13 = pneg %p2720_p12 }
 0x39a   : > { %p2726_p4 = pnand %p2725_p2, %p2721_p13 }
 0x39c   : > { %2729 = shalt.err (!%p2726_p4)
}
 0x39d   : > { %s2803_s22 = smov 128  }
 0x39e   : > { %2596 = dma.vmem_to_hbm [thread:$0]  (%p2895_p3), %s4071_s17, 2048, %s4067_s9, %s4078_s21, %s2803_s22, %s2803_s22, %s2798_s12  }
 0x39f PF: > { %p2602_p5 = scmp.ge.s32.totalorder %s2796_s8, 2  ;;  %s2201_s10 = sand.u32 1, %s2768_s24  }
 0x3a0   : > { %s2202_s20 = scalar_lea.sflag [#allocation3], %s2201_s10 }
 0x3a1   : > { %p2599_p6 = pnand %p2602_p5, %p2904_p8 }
 0x3a3   : > { %p2600_p7 = pneg %p2599_p6 }
 0x3a5   : > { %2763 = dma.done.wait (%p2600_p7), %s2202_s20, 2048  }
 0x3a6   : > { %2765 = vsyncadd (%p2600_p7), %s2202_s20, 4294965248  ;;  %s20_s8 = sadd.s32 1, %s2796_s8   ;;  %s4181_s14 = sld [smem:[#allocation5_spill]] }
 0x3a7   : > { %p17_p9 = scmp.ge.s32.totalorder %s20_s8, 6   ;;  %s4182_s12 = sld [smem:[#allocation6_spill]] }
 0x3a8   : > { %s4183_s24 = smov %s2772_s25  ;;  %s4184_s25 = smov %s2776_s26 }
 0x3a9   : > { %s4185_s26 = smov %s2913_s19  ;;  %s4186_s27 = smov %s2788_s29 }
 0x3aa   : > { %s4187_s28 = smov %s2792_s30  ;;  %19 = sbr.rel (!%p17_p9) target bundleno = 5 (0x5), region = 91 }
 0x3ac   : > { %s4188_s29 = smov %s4181_s14 }
 0x3ad   : > { %s4189_s30 = smov %s4182_s12 }
 0x3af   :  { %2207 = vsyncpa [#allocation3], 1 }
 0x3b0   :  { %2209 = vsyncpa [#allocation3 + $0x1], 1 }

</bundles_post_ra>
